<compile_context>
chip_gen: v7x
topology: tpu7x:2x2x1
jax: 0.10.0
libtpu: 0.0.40
codegen_flags: <defaults>
</compile_context>

<pallas_src>
import functools
import math

import jax
import jax.numpy as jnp
from jax.experimental import pallas as pl
from jax.experimental.pallas import tpu as pltpu


def _layernorm(x, w, b, eps=1e-6):
    mu = jnp.mean(x, axis=-1, keepdims=True)
    xc = x - mu
    var = jnp.mean(xc * xc, axis=-1, keepdims=True)
    inv = jax.lax.rsqrt(var + eps)
    return xc * inv * w + b


def _gelu(x, exact):
    if exact:
        # torch.nn.functional.gelu default (erf-based)
        return 0.5 * x * (1.0 + jax.lax.erf(x * (1.0 / math.sqrt(2.0))))
    # tanh approximation: maps to the EUP slot, overlaps with the fc2 matmul.
    c = math.sqrt(2.0 / math.pi)
    return 0.5 * x * (1.0 + jnp.tanh(c * (x + 0.044715 * (x * x * x))))


def block_kernel(num_heads, exact_gelu,
                 x_ref,
                 ln1_w_ref, ln1_b_ref,
                 wqkv_ref, bqkv_ref,
                 wo_ref, bo_ref,
                 ln2_w_ref, ln2_b_ref,
                 w1_ref, b1_ref, w2_ref, b2_ref,
                 out_ref):
    x = x_ref[0].astype(jnp.float32)            # (S, H)
    S, H = x.shape
    hd = H // num_heads
    cd = wqkv_ref.dtype                          # matmul compute dtype (bf16)

    # ---- attention branch ----
    resid1 = x
    xn = _layernorm(x, ln1_w_ref[0], ln1_b_ref[0])

    # Fused Q/K/V projection: one wide (S,H) x (H,3H) MXU pass, f32 accumulate.
    # Columns are head-major (head, {q,k,v}, hd); 1/sqrt(hd) is folded into the
    # Q columns and Q bias, so no score scaling is needed below.
    qkv = jnp.dot(xn.astype(cd), wqkv_ref[...],
                  preferred_element_type=jnp.float32) + bqkv_ref[0]
    qkv = qkv.astype(cd)                         # cast once; split copies bf16

    # Head split: one contiguous (S, 3*hd) chunk per head, then 3 lane slices.
    heads = jnp.stack(
        [qkv[:, h * 3 * hd:(h + 1) * 3 * hd] for h in range(num_heads)],
        axis=0)                                  # (nh, S, 3*hd) bf16
    qh = heads[:, :, 0 * hd:1 * hd]              # (nh, S, hd)
    kh = heads[:, :, 1 * hd:2 * hd]
    vh = heads[:, :, 2 * hd:3 * hd]

    # Head-batched score / context matmuls; K transpose folded into contraction.
    scores = jnp.einsum('nqd,nkd->nqk', qh, kh,
                        preferred_element_type=jnp.float32)
    scores = scores - jnp.max(scores, axis=-1, keepdims=True)
    e = jnp.exp(scores)
    denom = jnp.sum(e, axis=-1, keepdims=True)
    p = e * pl.reciprocal(denom, approx=True)    # softmax over keys (EUP recip)
    ctx_h = jnp.einsum('nqk,nkd->nqd', p.astype(cd), vh,
                       preferred_element_type=jnp.float32)

    # Merge heads in bf16 (half the relayout bytes), then one full-depth
    # (S,H)x(H,H) output projection (keeps MXU contraction depth at H).
    ctx_cd = ctx_h.astype(cd)
    ctx = jnp.concatenate([ctx_cd[h] for h in range(num_heads)], axis=-1)
    attn_out = jnp.dot(ctx, wo_ref[...],
                       preferred_element_type=jnp.float32) + bo_ref[0]
    x2 = attn_out + resid1

    # ---- MLP branch ----
    resid2 = x2
    xn2 = _layernorm(x2, ln2_w_ref[0], ln2_b_ref[0])
    y = jnp.dot(xn2.astype(cd), w1_ref[...],
                preferred_element_type=jnp.float32) + b1_ref[0]
    y = _gelu(y, exact_gelu)
    y = jnp.dot(y.astype(cd), w2_ref[...],
                preferred_element_type=jnp.float32) + b2_ref[0]
    out_ref[0] = (y + resid2).astype(out_ref.dtype)


def pack_block_params(params, num_heads, compute_dtype=jnp.bfloat16):
    """One-time packing of Block weights for the Pallas kernel.

    * Q/K/V fused into a single (H, 3H) matrix with head-major column order
      (head, {q,k,v}, head_dim) so the in-kernel split is contiguous per head.
    * The 1/sqrt(head_dim) attention scale is folded into the Q columns/bias.
    * Matmul weights stored in the compute dtype (bf16); LayerNorm params and
      biases stay f32.  Call once (or under jit) and reuse for every forward.
    """
    H = params["wq"].shape[0]
    assert H % num_heads == 0
    hd = H // num_heads
    scale = 1.0 / math.sqrt(hd)
    cd = jnp.dtype(compute_dtype)
    f32 = lambda a: jnp.asarray(a, jnp.float32)

    def head_cols(w):            # (R, H) -> (R, nh, hd)
        return f32(w).reshape(w.shape[0], num_heads, hd)

    wqkv = jnp.stack([head_cols(params["wq"]) * scale,
                      head_cols(params["wk"]),
                      head_cols(params["wv"])], axis=2)        # (H, nh, 3, hd)
    wqkv = wqkv.reshape(H, 3 * H).astype(cd)
    bqkv = jnp.stack([head_cols(params["bq"]) * scale,
                      head_cols(params["bk"]),
                      head_cols(params["bv"])], axis=2)        # (1, nh, 3, hd)
    bqkv = bqkv.reshape(1, 3 * H).astype(jnp.float32)

    return {
        "ln1_w": f32(params["ln1_w"]), "ln1_b": f32(params["ln1_b"]),
        "wqkv": wqkv, "bqkv": bqkv,
        "wo": f32(params["wo"]).astype(cd), "bo": f32(params["bo"]),
        "ln2_w": f32(params["ln2_w"]), "ln2_b": f32(params["ln2_b"]),
        "w1": f32(params["w1"]).astype(cd), "b1": f32(params["b1"]),
        "w2": f32(params["w2"]).astype(cd), "b2": f32(params["b2"]),
    }


def vit_block_forward(x, packed, num_heads, *, exact_gelu=False):
    """Fused transformer-Block forward as a single Pallas kernel (grid over B).

    Note: the grid is parallel over B; on v7x (2 TensorCores/chip) use B >= 2
    (ideally even) so both cores get work.
    """
    B, S, H = x.shape
    mlp_dim = packed["w1"].shape[1]
    assert packed["wqkv"].shape == (H, 3 * H)

    arg_order = ("ln1_w", "ln1_b", "wqkv", "bqkv", "wo", "bo",
                 "ln2_w", "ln2_b", "w1", "b1", "w2", "b2")
    weights = tuple(packed[k] for k in arg_order)
    args = (x,) + weights

    kernel = functools.partial(block_kernel, num_heads, exact_gelu)

    # Generation-aware scoped-VMEM ceiling (128 MiB on v5e/v6e, 64 MiB on v7x),
    # with ~8 MiB headroom for compiler internals.
    try:
        vmem_cap = int(pltpu.get_tpu_info().vmem_capacity_bytes)
    except Exception:                      # non-TPU backend / missing query
        vmem_cap = 64 * 2 ** 20
    ceiling = max(vmem_cap - (8 << 20), 32 << 20)

    weight_bytes = sum(int(a.size) * a.dtype.itemsize for a in weights)

    def want_bytes(weight_copies):
        nh = num_heads
        tile_bytes = 2 * 2 * S * H * x.dtype.itemsize     # dbl-buffered x/out
        # f32 activations (x, xn, qkv, x2, xn2, attn_out, ctx, out, fc1 out...)
        # + bf16 copies (qkv, head split/merge temporaries, fc1 input).
        act_bytes = (4 * (10 * S * H + 3 * nh * S * S + 3 * S * mlp_dim)
                     + 2 * (12 * S * H + nh * S * S + S * mlp_dim))
        return weight_copies * weight_bytes + tile_bytes + act_bytes

    def build(single_buffer_weights):
        def const_spec(shape):
            idx = lambda b: (0,) * len(shape)
            if single_buffer_weights:
                # Grid-invariant weights: one VMEM copy instead of the default
                # 2-deep pipeline buffers.
                return pl.BlockSpec(shape, idx, pipeline_mode=pl.Buffered(1))
            return pl.BlockSpec(shape, idx)

        in_specs = [
            pl.BlockSpec((1, S, H), lambda b: (b, 0, 0)),        # x (pipelined over B)
            const_spec((1, H)), const_spec((1, H)),              # ln1 w, b
            const_spec((H, 3 * H)), const_spec((1, 3 * H)),      # fused qkv w, b
            const_spec((H, H)), const_spec((1, H)),              # attn out proj
            const_spec((1, H)), const_spec((1, H)),              # ln2 w, b
            const_spec((H, mlp_dim)), const_spec((1, mlp_dim)),  # fc1
            const_spec((mlp_dim, H)), const_spec((1, H)),        # fc2
        ]
        vmem_limit = int(min(max(want_bytes(1 if single_buffer_weights else 2),
                                 32 << 20), ceiling))
        return pl.pallas_call(
            kernel,
            out_shape=jax.ShapeDtypeStruct((B, S, H), x.dtype),
            grid_spec=pltpu.PrefetchScalarGridSpec(
                num_scalar_prefetch=0,
                grid=(B,),
                in_specs=in_specs,
                out_specs=pl.BlockSpec((1, S, H), lambda b: (b, 0, 0)),
            ),
            compiler_params=pltpu.CompilerParams(
                dimension_semantics=("parallel",),
                vmem_limit_bytes=vmem_limit,
            ),
        )

    # Prefer single-buffered weights; fall back to the default double-buffered
    # pipeline only if tracing/compiling the Buffered(1) variant fails.  Eager
    # dispatch compiles synchronously, so only trace/compile errors can reach
    # the except; device execution is blocked on by the caller, outside this
    # try, so runtime errors are never masked by the fallback.
    try:
        return build(True)(*args)
    except Exception:
        return build(False)(*args)


def reference_forward(x, params, num_heads):
    """Pure-JAX f32 reference (mirrors the PyTorch Block forward, eval mode)."""
    B, S, H = x.shape
    hd = H // num_heads

    def ln(v, w, b):
        mu = jnp.mean(v, -1, keepdims=True)
        var = jnp.mean((v - mu) ** 2, -1, keepdims=True)
        return (v - mu) * jax.lax.rsqrt(var + 1e-6) * w[0] + b[0]

    h1 = x
    xn = ln(x, params["ln1_w"], params["ln1_b"])
    q = xn @ params["wq"] + params["bq"][0]
    k = xn @ params["wk"] + params["bk"][0]
    v = xn @ params["wv"] + params["bv"][0]

    def split(t):  # (B,S,H) -> (B,nh,S,hd)
        return t.reshape(B, S, num_heads, hd).transpose(0, 2, 1, 3)

    qh, kh, vh = split(q), split(k), split(v)
    scores = jnp.einsum("bhqd,bhkd->bhqk", qh, kh) / math.sqrt(hd)
    probs = jax.nn.softmax(scores, axis=-1)
    ctx = jnp.einsum("bhqk,bhkd->bhqd", probs, vh).transpose(0, 2, 1, 3).reshape(B, S, H)
    attn_out = ctx @ params["wo"] + params["bo"][0]
    x2 = attn_out + h1

    h2 = x2
    xn2 = ln(x2, params["ln2_w"], params["ln2_b"])
    y = xn2 @ params["w1"] + params["b1"][0]
    y = 0.5 * y * (1.0 + jax.lax.erf(y / math.sqrt(2.0)))
    y = y @ params["w2"] + params["b2"][0]
    return y + h2


def make_params(key, hidden, mlp_dim):
    keys = jax.random.split(key, 12)

    def w(k, shape, scale=0.05):
        return (scale * jax.random.normal(k, shape)).astype(jnp.float32)

    params = {
        "ln1_w": jnp.ones((1, hidden), jnp.float32),
        "ln1_b": jnp.zeros((1, hidden), jnp.float32),
        "ln2_w": jnp.ones((1, hidden), jnp.float32),
        "ln2_b": jnp.zeros((1, hidden), jnp.float32),
        "wq": w(keys[0], (hidden, hidden)), "bq": w(keys[1], (1, hidden), 0.01),
        "wk": w(keys[2], (hidden, hidden)), "bk": w(keys[3], (1, hidden), 0.01),
        "wv": w(keys[4], (hidden, hidden)), "bv": w(keys[5], (1, hidden), 0.01),
        "wo": w(keys[6], (hidden, hidden)), "bo": w(keys[7], (1, hidden), 0.01),
        "w1": w(keys[8], (hidden, mlp_dim)), "b1": w(keys[9], (1, mlp_dim), 1e-6),
        "w2": w(keys[10], (mlp_dim, hidden)), "b2": w(keys[11], (1, hidden), 1e-6),
    }
    return params


if __name__ == "__main__":
    B, S, H = 2, 8, 32
    num_heads = 4
    mlp_dim = 64

    key = jax.random.PRNGKey(0)
    kx, kp = jax.random.split(key)
    x = jax.random.normal(kx, (B, S, H), dtype=jnp.float32)
    params = make_params(kp, H, mlp_dim)

    packed = pack_block_params(params, num_heads)          # one-time packing
    out = jax.block_until_ready(vit_block_forward(x, packed, num_heads))

    ref = reference_forward(x, params, num_heads)
    assert out.shape == (B, S, H)
    err = float(jnp.max(jnp.abs(out - ref)))
    # bf16 matmul inputs (f32 accumulation) + approximate softmax reciprocal
    # + tanh GELU => compare against the pure-f32 erf reference at bf16-level
    # tolerance.
    assert err < 2e-2, err
    print("KERNEL_OK")
</pallas_src>

<mosaic_0001>
module attributes {stable_mosaic.version = 11 : i64} {
  func.func @block_kernel(%arg0: i32, %arg1: memref<1x8x32xf32, #tpu.memory_space<vmem>>, %arg2: memref<1x32xf32, #tpu.memory_space<vmem>>, %arg3: memref<1x32xf32, #tpu.memory_space<vmem>>, %arg4: memref<32x96xbf16, #tpu.memory_space<vmem>>, %arg5: memref<1x96xf32, #tpu.memory_space<vmem>>, %arg6: memref<32x32xbf16, #tpu.memory_space<vmem>>, %arg7: memref<1x32xf32, #tpu.memory_space<vmem>>, %arg8: memref<1x32xf32, #tpu.memory_space<vmem>>, %arg9: memref<1x32xf32, #tpu.memory_space<vmem>>, %arg10: memref<32x64xbf16, #tpu.memory_space<vmem>>, %arg11: memref<1x64xf32, #tpu.memory_space<vmem>>, %arg12: memref<64x32xbf16, #tpu.memory_space<vmem>>, %arg13: memref<1x32xf32, #tpu.memory_space<vmem>>, %arg14: memref<1x8x32xf32, #tpu.memory_space<vmem>>) attributes {dimension_semantics = [#tpu.dimension_semantics<parallel>], iteration_bounds = array<i64: 2>, scalar_prefetch = 0 : i64, scratch_operands = 0 : i64, tpu.core_type = #tpu.core_type<tc>, window_params = [{transform_indices = @transform_0, window_bounds = array<i64: 1, 8, 32>}, {pipeline_mode = #tpu.pipeline_mode<synchronous>, transform_indices = @transform_1, window_bounds = array<i64: 1, 32>}, {pipeline_mode = #tpu.pipeline_mode<synchronous>, transform_indices = @transform_2, window_bounds = array<i64: 1, 32>}, {pipeline_mode = #tpu.pipeline_mode<synchronous>, transform_indices = @transform_3, window_bounds = array<i64: 32, 96>}, {pipeline_mode = #tpu.pipeline_mode<synchronous>, transform_indices = @transform_4, window_bounds = array<i64: 1, 96>}, {pipeline_mode = #tpu.pipeline_mode<synchronous>, transform_indices = @transform_5, window_bounds = array<i64: 32, 32>}, {pipeline_mode = #tpu.pipeline_mode<synchronous>, transform_indices = @transform_6, window_bounds = array<i64: 1, 32>}, {pipeline_mode = #tpu.pipeline_mode<synchronous>, transform_indices = @transform_7, window_bounds = array<i64: 1, 32>}, {pipeline_mode = #tpu.pipeline_mode<synchronous>, transform_indices = @transform_8, window_bounds = array<i64: 1, 32>}, {pipeline_mode = #tpu.pipeline_mode<synchronous>, transform_indices = @transform_9, window_bounds = array<i64: 32, 64>}, {pipeline_mode = #tpu.pipeline_mode<synchronous>, transform_indices = @transform_10, window_bounds = array<i64: 1, 64>}, {pipeline_mode = #tpu.pipeline_mode<synchronous>, transform_indices = @transform_11, window_bounds = array<i64: 64, 32>}, {pipeline_mode = #tpu.pipeline_mode<synchronous>, transform_indices = @transform_12, window_bounds = array<i64: 1, 32>}, {transform_indices = @transform_13, window_bounds = array<i64: 1, 8, 32>}]} {
    %c0 = arith.constant 0 : index
    %c0_0 = arith.constant 0 : index
    %c0_1 = arith.constant 0 : index
    %0 = vector.load %arg1[%c0, %c0_0, %c0_1] : memref<1x8x32xf32, #tpu.memory_space<vmem>>, vector<1x8x32xf32>
    %1 = vector.shape_cast %0 : vector<1x8x32xf32> to vector<8x32xf32>
    %c0_2 = arith.constant 0 : index
    %c0_3 = arith.constant 0 : index
    %2 = vector.load %arg2[%c0_2, %c0_3] : memref<1x32xf32, #tpu.memory_space<vmem>>, vector<1x32xf32>
    %3 = vector.shape_cast %2 : vector<1x32xf32> to vector<32xf32>
    %c0_4 = arith.constant 0 : index
    %c0_5 = arith.constant 0 : index
    %4 = vector.load %arg3[%c0_4, %c0_5] : memref<1x32xf32, #tpu.memory_space<vmem>>, vector<1x32xf32>
    %5 = vector.shape_cast %4 : vector<1x32xf32> to vector<32xf32>
    %cst = arith.constant dense<0.000000e+00> : vector<8xf32>
    %6 = vector.multi_reduction <add>, %1, %cst [1] : vector<8x32xf32> to vector<8xf32>
    %7 = vector.shape_cast %6 : vector<8xf32> to vector<8x1xf32>
    %cst_6 = arith.constant 3.200000e+01 : f32
    %8 = vector.broadcast %cst_6 : f32 to vector<8x1xf32>
    %9 = arith.divf %7, %8 : vector<8x1xf32>
    %10 = vector.broadcast %9 : vector<8x1xf32> to vector<8x32xf32>
    %11 = arith.subf %1, %10 : vector<8x32xf32>
    %12 = arith.mulf %11, %11 : vector<8x32xf32>
    %cst_7 = arith.constant dense<0.000000e+00> : vector<8xf32>
    %13 = vector.multi_reduction <add>, %12, %cst_7 [1] : vector<8x32xf32> to vector<8xf32>
    %14 = vector.shape_cast %13 : vector<8xf32> to vector<8x1xf32>
    %cst_8 = arith.constant 3.200000e+01 : f32
    %15 = vector.broadcast %cst_8 : f32 to vector<8x1xf32>
    %16 = arith.divf %14, %15 : vector<8x1xf32>
    %cst_9 = arith.constant 9.99999997E-7 : f32
    %17 = vector.broadcast %cst_9 : f32 to vector<8x1xf32>
    %18 = arith.addf %16, %17 : vector<8x1xf32>
    %19 = math.rsqrt %18 : vector<8x1xf32>
    %20 = vector.broadcast %19 : vector<8x1xf32> to vector<8x32xf32>
    %21 = arith.mulf %11, %20 : vector<8x32xf32>
    %22 = vector.shape_cast %3 : vector<32xf32> to vector<1x32xf32>
    %23 = vector.broadcast %22 : vector<1x32xf32> to vector<8x32xf32>
    %24 = arith.mulf %21, %23 : vector<8x32xf32>
    %25 = vector.shape_cast %5 : vector<32xf32> to vector<1x32xf32>
    %26 = vector.broadcast %25 : vector<1x32xf32> to vector<8x32xf32>
    %27 = arith.addf %24, %26 : vector<8x32xf32>
    %28 = arith.truncf %27 : vector<8x32xf32> to vector<8x32xbf16>
    %c0_10 = arith.constant 0 : index
    %c0_11 = arith.constant 0 : index
    %29 = vector.load %arg4[%c0_10, %c0_11] : memref<32x96xbf16, #tpu.memory_space<vmem>>, vector<32x96xbf16>
    %cst_12 = arith.constant dense<0.000000e+00> : vector<8x96xf32>
    %30 = tpu.matmul %28, %29, %cst_12 {dimension_numbers = #tpu.dot_dimension_numbers<[1], [0], [0], [1], [0, 0, 1, 1], [], []>} : vector<8x32xbf16>, vector<32x96xbf16>, vector<8x96xf32> -> vector<8x96xf32>
    %c0_13 = arith.constant 0 : index
    %c0_14 = arith.constant 0 : index
    %31 = vector.load %arg5[%c0_13, %c0_14] : memref<1x96xf32, #tpu.memory_space<vmem>>, vector<1x96xf32>
    %32 = vector.shape_cast %31 : vector<1x96xf32> to vector<96xf32>
    %33 = vector.shape_cast %32 : vector<96xf32> to vector<1x96xf32>
    %34 = vector.broadcast %33 : vector<1x96xf32> to vector<8x96xf32>
    %35 = arith.addf %30, %34 : vector<8x96xf32>
    %36 = arith.truncf %35 : vector<8x96xf32> to vector<8x96xbf16>
    %37 = vector.extract_strided_slice %36 {offsets = [0, 0], sizes = [8, 24], strides = [1, 1]} : vector<8x96xbf16> to vector<8x24xbf16>
    %38 = vector.extract_strided_slice %36 {offsets = [0, 24], sizes = [8, 24], strides = [1, 1]} : vector<8x96xbf16> to vector<8x24xbf16>
    %39 = vector.extract_strided_slice %36 {offsets = [0, 48], sizes = [8, 24], strides = [1, 1]} : vector<8x96xbf16> to vector<8x24xbf16>
    %40 = vector.extract_strided_slice %36 {offsets = [0, 72], sizes = [8, 24], strides = [1, 1]} : vector<8x96xbf16> to vector<8x24xbf16>
    %41 = vector.shape_cast %37 : vector<8x24xbf16> to vector<1x8x24xbf16>
    %42 = vector.shape_cast %38 : vector<8x24xbf16> to vector<1x8x24xbf16>
    %43 = vector.shape_cast %39 : vector<8x24xbf16> to vector<1x8x24xbf16>
    %44 = vector.shape_cast %40 : vector<8x24xbf16> to vector<1x8x24xbf16>
    %45 = tpu.concatenate %41, %42, %43, %44 in 0 : vector<1x8x24xbf16>, vector<1x8x24xbf16>, vector<1x8x24xbf16>, vector<1x8x24xbf16> -> vector<4x8x24xbf16>
    %46 = vector.extract_strided_slice %45 {offsets = [0, 0, 0], sizes = [4, 8, 8], strides = [1, 1, 1]} : vector<4x8x24xbf16> to vector<4x8x8xbf16>
    %47 = vector.extract_strided_slice %45 {offsets = [0, 0, 8], sizes = [4, 8, 8], strides = [1, 1, 1]} : vector<4x8x24xbf16> to vector<4x8x8xbf16>
    %48 = vector.extract_strided_slice %45 {offsets = [0, 0, 16], sizes = [4, 8, 8], strides = [1, 1, 1]} : vector<4x8x24xbf16> to vector<4x8x8xbf16>
    "tpu.trace_start"() <{level = 10 : i32, message = "nqd,nkd->nqk"}> : () -> ()
    %cst_15 = arith.constant dense<0.000000e+00> : vector<4x8x8xf32>
    %49 = tpu.matmul %46, %47, %cst_15 {dimension_numbers = #tpu.dot_dimension_numbers<[2], [2], [1], [1], [0, 0, 0, 1, 1, 1], [0], [0]>} : vector<4x8x8xbf16>, vector<4x8x8xbf16>, vector<4x8x8xf32> -> vector<4x8x8xf32>
    "tpu.trace_stop"() : () -> ()
    %cst_16 = arith.constant dense<0xFF800000> : vector<4x8xf32>
    %50 = vector.multi_reduction <maximumf>, %49, %cst_16 [2] : vector<4x8x8xf32> to vector<4x8xf32>
    %51 = vector.shape_cast %50 : vector<4x8xf32> to vector<4x8x1xf32>
    %52 = vector.broadcast %51 : vector<4x8x1xf32> to vector<4x8x8xf32>
    %53 = arith.subf %49, %52 : vector<4x8x8xf32>
    %54 = math.exp %53 : vector<4x8x8xf32>
    %cst_17 = arith.constant dense<0.000000e+00> : vector<4x8xf32>
    %55 = vector.multi_reduction <add>, %54, %cst_17 [2] : vector<4x8x8xf32> to vector<4x8xf32>
    %56 = vector.shape_cast %55 : vector<4x8xf32> to vector<4x8x1xf32>
    %57 = tpu.reciprocal %56 {approx = true} : vector<4x8x1xf32> -> vector<4x8x1xf32>
    %58 = vector.broadcast %57 : vector<4x8x1xf32> to vector<4x8x8xf32>
    %59 = arith.mulf %54, %58 : vector<4x8x8xf32>
    %60 = arith.truncf %59 : vector<4x8x8xf32> to vector<4x8x8xbf16>
    "tpu.trace_start"() <{level = 10 : i32, message = "nqk,nkd->nqd"}> : () -> ()
    %cst_18 = arith.constant dense<0.000000e+00> : vector<4x8x8xf32>
    %61 = tpu.matmul %60, %48, %cst_18 {dimension_numbers = #tpu.dot_dimension_numbers<[2], [1], [1], [2], [0, 0, 0, 1, 1, 2], [0], [0]>} : vector<4x8x8xbf16>, vector<4x8x8xbf16>, vector<4x8x8xf32> -> vector<4x8x8xf32>
    "tpu.trace_stop"() : () -> ()
    %62 = arith.truncf %61 : vector<4x8x8xf32> to vector<4x8x8xbf16>
    %63 = vector.extract_strided_slice %62 {offsets = [0, 0, 0], sizes = [1, 8, 8], strides = [1, 1, 1]} : vector<4x8x8xbf16> to vector<1x8x8xbf16>
    %64 = vector.shape_cast %63 : vector<1x8x8xbf16> to vector<8x8xbf16>
    %65 = vector.extract_strided_slice %62 {offsets = [1, 0, 0], sizes = [1, 8, 8], strides = [1, 1, 1]} : vector<4x8x8xbf16> to vector<1x8x8xbf16>
    %66 = vector.shape_cast %65 : vector<1x8x8xbf16> to vector<8x8xbf16>
    %67 = vector.extract_strided_slice %62 {offsets = [2, 0, 0], sizes = [1, 8, 8], strides = [1, 1, 1]} : vector<4x8x8xbf16> to vector<1x8x8xbf16>
    %68 = vector.shape_cast %67 : vector<1x8x8xbf16> to vector<8x8xbf16>
    %69 = vector.extract_strided_slice %62 {offsets = [3, 0, 0], sizes = [1, 8, 8], strides = [1, 1, 1]} : vector<4x8x8xbf16> to vector<1x8x8xbf16>
    %70 = vector.shape_cast %69 : vector<1x8x8xbf16> to vector<8x8xbf16>
    %71 = tpu.concatenate %64, %66, %68, %70 in 1 : vector<8x8xbf16>, vector<8x8xbf16>, vector<8x8xbf16>, vector<8x8xbf16> -> vector<8x32xbf16>
    %c0_19 = arith.constant 0 : index
    %c0_20 = arith.constant 0 : index
    %72 = vector.load %arg6[%c0_19, %c0_20] : memref<32x32xbf16, #tpu.memory_space<vmem>>, vector<32x32xbf16>
    %cst_21 = arith.constant dense<0.000000e+00> : vector<8x32xf32>
    %73 = tpu.matmul %71, %72, %cst_21 {dimension_numbers = #tpu.dot_dimension_numbers<[1], [0], [0], [1], [0, 0, 1, 1], [], []>} : vector<8x32xbf16>, vector<32x32xbf16>, vector<8x32xf32> -> vector<8x32xf32>
    %c0_22 = arith.constant 0 : index
    %c0_23 = arith.constant 0 : index
    %74 = vector.load %arg7[%c0_22, %c0_23] : memref<1x32xf32, #tpu.memory_space<vmem>>, vector<1x32xf32>
    %75 = vector.shape_cast %74 : vector<1x32xf32> to vector<32xf32>
    %76 = vector.shape_cast %75 : vector<32xf32> to vector<1x32xf32>
    %77 = vector.broadcast %76 : vector<1x32xf32> to vector<8x32xf32>
    %78 = arith.addf %73, %77 : vector<8x32xf32>
    %79 = arith.addf %78, %1 : vector<8x32xf32>
    %c0_24 = arith.constant 0 : index
    %c0_25 = arith.constant 0 : index
    %80 = vector.load %arg8[%c0_24, %c0_25] : memref<1x32xf32, #tpu.memory_space<vmem>>, vector<1x32xf32>
    %81 = vector.shape_cast %80 : vector<1x32xf32> to vector<32xf32>
    %c0_26 = arith.constant 0 : index
    %c0_27 = arith.constant 0 : index
    %82 = vector.load %arg9[%c0_26, %c0_27] : memref<1x32xf32, #tpu.memory_space<vmem>>, vector<1x32xf32>
    %83 = vector.shape_cast %82 : vector<1x32xf32> to vector<32xf32>
    %cst_28 = arith.constant dense<0.000000e+00> : vector<8xf32>
    %84 = vector.multi_reduction <add>, %79, %cst_28 [1] : vector<8x32xf32> to vector<8xf32>
    %85 = vector.shape_cast %84 : vector<8xf32> to vector<8x1xf32>
    %cst_29 = arith.constant 3.200000e+01 : f32
    %86 = vector.broadcast %cst_29 : f32 to vector<8x1xf32>
    %87 = arith.divf %85, %86 : vector<8x1xf32>
    %88 = vector.broadcast %87 : vector<8x1xf32> to vector<8x32xf32>
    %89 = arith.subf %79, %88 : vector<8x32xf32>
    %90 = arith.mulf %89, %89 : vector<8x32xf32>
    %cst_30 = arith.constant dense<0.000000e+00> : vector<8xf32>
    %91 = vector.multi_reduction <add>, %90, %cst_30 [1] : vector<8x32xf32> to vector<8xf32>
    %92 = vector.shape_cast %91 : vector<8xf32> to vector<8x1xf32>
    %cst_31 = arith.constant 3.200000e+01 : f32
    %93 = vector.broadcast %cst_31 : f32 to vector<8x1xf32>
    %94 = arith.divf %92, %93 : vector<8x1xf32>
    %cst_32 = arith.constant 9.99999997E-7 : f32
    %95 = vector.broadcast %cst_32 : f32 to vector<8x1xf32>
    %96 = arith.addf %94, %95 : vector<8x1xf32>
    %97 = math.rsqrt %96 : vector<8x1xf32>
    %98 = vector.broadcast %97 : vector<8x1xf32> to vector<8x32xf32>
    %99 = arith.mulf %89, %98 : vector<8x32xf32>
    %100 = vector.shape_cast %81 : vector<32xf32> to vector<1x32xf32>
    %101 = vector.broadcast %100 : vector<1x32xf32> to vector<8x32xf32>
    %102 = arith.mulf %99, %101 : vector<8x32xf32>
    %103 = vector.shape_cast %83 : vector<32xf32> to vector<1x32xf32>
    %104 = vector.broadcast %103 : vector<1x32xf32> to vector<8x32xf32>
    %105 = arith.addf %102, %104 : vector<8x32xf32>
    %106 = arith.truncf %105 : vector<8x32xf32> to vector<8x32xbf16>
    %c0_33 = arith.constant 0 : index
    %c0_34 = arith.constant 0 : index
    %107 = vector.load %arg10[%c0_33, %c0_34] : memref<32x64xbf16, #tpu.memory_space<vmem>>, vector<32x64xbf16>
    %cst_35 = arith.constant dense<0.000000e+00> : vector<8x64xf32>
    %108 = tpu.matmul %106, %107, %cst_35 {dimension_numbers = #tpu.dot_dimension_numbers<[1], [0], [0], [1], [0, 0, 1, 1], [], []>} : vector<8x32xbf16>, vector<32x64xbf16>, vector<8x64xf32> -> vector<8x64xf32>
    %c0_36 = arith.constant 0 : index
    %c0_37 = arith.constant 0 : index
    %109 = vector.load %arg11[%c0_36, %c0_37] : memref<1x64xf32, #tpu.memory_space<vmem>>, vector<1x64xf32>
    %110 = vector.shape_cast %109 : vector<1x64xf32> to vector<64xf32>
    %111 = vector.shape_cast %110 : vector<64xf32> to vector<1x64xf32>
    %112 = vector.broadcast %111 : vector<1x64xf32> to vector<8x64xf32>
    %113 = arith.addf %108, %112 : vector<8x64xf32>
    %cst_38 = arith.constant 5.000000e-01 : f32
    %114 = vector.broadcast %cst_38 : f32 to vector<8x64xf32>
    %115 = arith.mulf %114, %113 : vector<8x64xf32>
    %116 = arith.mulf %113, %113 : vector<8x64xf32>
    %117 = arith.mulf %116, %113 : vector<8x64xf32>
    %cst_39 = arith.constant 4.471500e-02 : f32
    %118 = vector.broadcast %cst_39 : f32 to vector<8x64xf32>
    %119 = arith.mulf %118, %117 : vector<8x64xf32>
    %120 = arith.addf %113, %119 : vector<8x64xf32>
    %cst_40 = arith.constant 0.797884583 : f32
    %121 = vector.broadcast %cst_40 : f32 to vector<8x64xf32>
    %122 = arith.mulf %121, %120 : vector<8x64xf32>
    %123 = math.tanh %122 : vector<8x64xf32>
    %cst_41 = arith.constant 1.000000e+00 : f32
    %124 = vector.broadcast %cst_41 : f32 to vector<8x64xf32>
    %125 = arith.addf %124, %123 : vector<8x64xf32>
    %126 = arith.mulf %115, %125 : vector<8x64xf32>
    %127 = arith.truncf %126 : vector<8x64xf32> to vector<8x64xbf16>
    %c0_42 = arith.constant 0 : index
    %c0_43 = arith.constant 0 : index
    %128 = vector.load %arg12[%c0_42, %c0_43] : memref<64x32xbf16, #tpu.memory_space<vmem>>, vector<64x32xbf16>
    %cst_44 = arith.constant dense<0.000000e+00> : vector<8x32xf32>
    %129 = tpu.matmul %127, %128, %cst_44 {dimension_numbers = #tpu.dot_dimension_numbers<[1], [0], [0], [1], [0, 0, 1, 1], [], []>} : vector<8x64xbf16>, vector<64x32xbf16>, vector<8x32xf32> -> vector<8x32xf32>
    %c0_45 = arith.constant 0 : index
    %c0_46 = arith.constant 0 : index
    %130 = vector.load %arg13[%c0_45, %c0_46] : memref<1x32xf32, #tpu.memory_space<vmem>>, vector<1x32xf32>
    %131 = vector.shape_cast %130 : vector<1x32xf32> to vector<32xf32>
    %132 = vector.shape_cast %131 : vector<32xf32> to vector<1x32xf32>
    %133 = vector.broadcast %132 : vector<1x32xf32> to vector<8x32xf32>
    %134 = arith.addf %129, %133 : vector<8x32xf32>
    %135 = arith.addf %134, %79 : vector<8x32xf32>
    %c0_47 = arith.constant 0 : index
    %c0_48 = arith.constant 0 : index
    %c0_49 = arith.constant 0 : index
    %136 = vector.load %arg14[%c0_47, %c0_48, %c0_49] : memref<1x8x32xf32, #tpu.memory_space<vmem>>, vector<1x8x32xf32>
    %137 = vector.shape_cast %136 : vector<1x8x32xf32> to vector<8x32xf32>
    %138 = vector.shape_cast %135 : vector<8x32xf32> to vector<1x8x32xf32>
    tpu.vector_store %arg14[%c0_47, %c0_48, %c0_49], %138 {strides = array<i32>} : memref<1x8x32xf32, #tpu.memory_space<vmem>>, vector<1x8x32xf32>,
    return
  }
  func.func @transform_0(%arg0: i32) -> (i32, i32, i32) {
    %c0_i32 = arith.constant 0 : i32
    %c0_i32_0 = arith.constant 0 : i32
    %c0_i32_1 = arith.constant 0 : i32
    return %arg0, %c0_i32, %c0_i32_0 : i32, i32, i32
  }
  func.func @transform_1(%arg0: i32) -> (i32, i32) {
    %c0_i32 = arith.constant 0 : i32
    %c0_i32_0 = arith.constant 0 : i32
    %c0_i32_1 = arith.constant 0 : i32
    return %c0_i32, %c0_i32_0 : i32, i32
  }
  func.func @transform_2(%arg0: i32) -> (i32, i32) {
    %c0_i32 = arith.constant 0 : i32
    %c0_i32_0 = arith.constant 0 : i32
    %c0_i32_1 = arith.constant 0 : i32
    return %c0_i32, %c0_i32_0 : i32, i32
  }
  func.func @transform_3(%arg0: i32) -> (i32, i32) {
    %c0_i32 = arith.constant 0 : i32
    %c0_i32_0 = arith.constant 0 : i32
    %c0_i32_1 = arith.constant 0 : i32
    return %c0_i32, %c0_i32_0 : i32, i32
  }
  func.func @transform_4(%arg0: i32) -> (i32, i32) {
    %c0_i32 = arith.constant 0 : i32
    %c0_i32_0 = arith.constant 0 : i32
    %c0_i32_1 = arith.constant 0 : i32
    return %c0_i32, %c0_i32_0 : i32, i32
  }
  func.func @transform_5(%arg0: i32) -> (i32, i32) {
    %c0_i32 = arith.constant 0 : i32
    %c0_i32_0 = arith.constant 0 : i32
    %c0_i32_1 = arith.constant 0 : i32
    return %c0_i32, %c0_i32_0 : i32, i32
  }
  func.func @transform_6(%arg0: i32) -> (i32, i32) {
    %c0_i32 = arith.constant 0 : i32
    %c0_i32_0 = arith.constant 0 : i32
    %c0_i32_1 = arith.constant 0 : i32
    return %c0_i32, %c0_i32_0 : i32, i32
  }
  func.func @transform_7(%arg0: i32) -> (i32, i32) {
    %c0_i32 = arith.constant 0 : i32
    %c0_i32_0 = arith.constant 0 : i32
    %c0_i32_1 = arith.constant 0 : i32
    return %c0_i32, %c0_i32_0 : i32, i32
  }
  func.func @transform_8(%arg0: i32) -> (i32, i32) {
    %c0_i32 = arith.constant 0 : i32
    %c0_i32_0 = arith.constant 0 : i32
    %c0_i32_1 = arith.constant 0 : i32
    return %c0_i32, %c0_i32_0 : i32, i32
  }
  func.func @transform_9(%arg0: i32) -> (i32, i32) {
    %c0_i32 = arith.constant 0 : i32
    %c0_i32_0 = arith.constant 0 : i32
    %c0_i32_1 = arith.constant 0 : i32
    return %c0_i32, %c0_i32_0 : i32, i32
  }
  func.func @transform_10(%arg0: i32) -> (i32, i32) {
    %c0_i32 = arith.constant 0 : i32
    %c0_i32_0 = arith.constant 0 : i32
    %c0_i32_1 = arith.constant 0 : i32
    return %c0_i32, %c0_i32_0 : i32, i32
  }
  func.func @transform_11(%arg0: i32) -> (i32, i32) {
    %c0_i32 = arith.constant 0 : i32
    %c0_i32_0 = arith.constant 0 : i32
    %c0_i32_1 = arith.constant 0 : i32
    return %c0_i32, %c0_i32_0 : i32, i32
  }
  func.func @transform_12(%arg0: i32) -> (i32, i32) {
    %c0_i32 = arith.constant 0 : i32
    %c0_i32_0 = arith.constant 0 : i32
    %c0_i32_1 = arith.constant 0 : i32
    return %c0_i32, %c0_i32_0 : i32, i32
  }
  func.func @transform_13(%arg0: i32) -> (i32, i32, i32) {
    %c0_i32 = arith.constant 0 : i32
    %c0_i32_0 = arith.constant 0 : i32
    %c0_i32_1 = arith.constant 0 : i32
    return %arg0, %c0_i32, %c0_i32_0 : i32, i32, i32
  }
}

module attributes {stable_mosaic.version = 11 : i64} {
  func.func @block_kernel(%arg0: i32, %arg1: memref<1x8x32xf32, #tpu.memory_space<vmem>>, %arg2: memref<1x32xf32, #tpu.memory_space<vmem>>, %arg3: memref<1x32xf32, #tpu.memory_space<vmem>>, %arg4: memref<32x96xbf16, #tpu.memory_space<vmem>>, %arg5: memref<1x96xf32, #tpu.memory_space<vmem>>, %arg6: memref<32x32xbf16, #tpu.memory_space<vmem>>, %arg7: memref<1x32xf32, #tpu.memory_space<vmem>>, %arg8: memref<1x32xf32, #tpu.memory_space<vmem>>, %arg9: memref<1x32xf32, #tpu.memory_space<vmem>>, %arg10: memref<32x64xbf16, #tpu.memory_space<vmem>>, %arg11: memref<1x64xf32, #tpu.memory_space<vmem>>, %arg12: memref<64x32xbf16, #tpu.memory_space<vmem>>, %arg13: memref<1x32xf32, #tpu.memory_space<vmem>>, %arg14: memref<1x8x32xf32, #tpu.memory_space<vmem>>) attributes {dimension_semantics = [#tpu.dimension_semantics<parallel>], iteration_bounds = array<i64: 2>, scalar_prefetch = 0 : i64, scratch_operands = 0 : i64, tpu.core_type = #tpu.core_type<tc>, window_params = [{transform_indices = @transform_0, window_bounds = array<i64: 1, 8, 32>}, {pipeline_mode = #tpu.pipeline_mode<synchronous>, transform_indices = @transform_1, window_bounds = array<i64: 1, 32>}, {pipeline_mode = #tpu.pipeline_mode<synchronous>, transform_indices = @transform_2, window_bounds = array<i64: 1, 32>}, {pipeline_mode = #tpu.pipeline_mode<synchronous>, transform_indices = @transform_3, window_bounds = array<i64: 32, 96>}, {pipeline_mode = #tpu.pipeline_mode<synchronous>, transform_indices = @transform_4, window_bounds = array<i64: 1, 96>}, {pipeline_mode = #tpu.pipeline_mode<synchronous>, transform_indices = @transform_5, window_bounds = array<i64: 32, 32>}, {pipeline_mode = #tpu.pipeline_mode<synchronous>, transform_indices = @transform_6, window_bounds = array<i64: 1, 32>}, {pipeline_mode = #tpu.pipeline_mode<synchronous>, transform_indices = @transform_7, window_bounds = array<i64: 1, 32>}, {pipeline_mode = #tpu.pipeline_mode<synchronous>, transform_indices = @transform_8, window_bounds = array<i64: 1, 32>}, {pipeline_mode = #tpu.pipeline_mode<synchronous>, transform_indices = @transform_9, window_bounds = array<i64: 32, 64>}, {pipeline_mode = #tpu.pipeline_mode<synchronous>, transform_indices = @transform_10, window_bounds = array<i64: 1, 64>}, {pipeline_mode = #tpu.pipeline_mode<synchronous>, transform_indices = @transform_11, window_bounds = array<i64: 64, 32>}, {pipeline_mode = #tpu.pipeline_mode<synchronous>, transform_indices = @transform_12, window_bounds = array<i64: 1, 32>}, {transform_indices = @transform_13, window_bounds = array<i64: 1, 8, 32>}]} {
    %c0 = arith.constant 0 : index
    %c0_0 = arith.constant 0 : index
    %c0_1 = arith.constant 0 : index
    %0 = vector.load %arg1[%c0, %c0_0, %c0_1] : memref<1x8x32xf32, #tpu.memory_space<vmem>>, vector<1x8x32xf32>
    %1 = vector.shape_cast %0 : vector<1x8x32xf32> to vector<8x32xf32>
    %c0_2 = arith.constant 0 : index
    %c0_3 = arith.constant 0 : index
    %2 = vector.load %arg2[%c0_2, %c0_3] : memref<1x32xf32, #tpu.memory_space<vmem>>, vector<1x32xf32>
    %3 = vector.shape_cast %2 : vector<1x32xf32> to vector<32xf32>
    %c0_4 = arith.constant 0 : index
    %c0_5 = arith.constant 0 : index
    %4 = vector.load %arg3[%c0_4, %c0_5] : memref<1x32xf32, #tpu.memory_space<vmem>>, vector<1x32xf32>
    %5 = vector.shape_cast %4 : vector<1x32xf32> to vector<32xf32>
    %cst = arith.constant dense<0.000000e+00> : vector<8xf32>
    %6 = vector.multi_reduction <add>, %1, %cst [1] : vector<8x32xf32> to vector<8xf32>
    %7 = vector.shape_cast %6 : vector<8xf32> to vector<8x1xf32>
    %cst_6 = arith.constant 3.200000e+01 : f32
    %8 = vector.broadcast %cst_6 : f32 to vector<8x1xf32>
    %9 = arith.divf %7, %8 : vector<8x1xf32>
    %10 = vector.broadcast %9 : vector<8x1xf32> to vector<8x32xf32>
    %11 = arith.subf %1, %10 : vector<8x32xf32>
    %12 = arith.mulf %11, %11 : vector<8x32xf32>
    %cst_7 = arith.constant dense<0.000000e+00> : vector<8xf32>
    %13 = vector.multi_reduction <add>, %12, %cst_7 [1] : vector<8x32xf32> to vector<8xf32>
    %14 = vector.shape_cast %13 : vector<8xf32> to vector<8x1xf32>
    %cst_8 = arith.constant 3.200000e+01 : f32
    %15 = vector.broadcast %cst_8 : f32 to vector<8x1xf32>
    %16 = arith.divf %14, %15 : vector<8x1xf32>
    %cst_9 = arith.constant 9.99999997E-7 : f32
    %17 = vector.broadcast %cst_9 : f32 to vector<8x1xf32>
    %18 = arith.addf %16, %17 : vector<8x1xf32>
    %19 = math.rsqrt %18 : vector<8x1xf32>
    %20 = vector.broadcast %19 : vector<8x1xf32> to vector<8x32xf32>
    %21 = arith.mulf %11, %20 : vector<8x32xf32>
    %22 = vector.shape_cast %3 : vector<32xf32> to vector<1x32xf32>
    %23 = vector.broadcast %22 : vector<1x32xf32> to vector<8x32xf32>
    %24 = arith.mulf %21, %23 : vector<8x32xf32>
    %25 = vector.shape_cast %5 : vector<32xf32> to vector<1x32xf32>
    %26 = vector.broadcast %25 : vector<1x32xf32> to vector<8x32xf32>
    %27 = arith.addf %24, %26 : vector<8x32xf32>
    %28 = arith.truncf %27 : vector<8x32xf32> to vector<8x32xbf16>
    %c0_10 = arith.constant 0 : index
    %c0_11 = arith.constant 0 : index
    %29 = vector.load %arg4[%c0_10, %c0_11] : memref<32x96xbf16, #tpu.memory_space<vmem>>, vector<32x96xbf16>
    %cst_12 = arith.constant dense<0.000000e+00> : vector<8x96xf32>
    %30 = tpu.matmul %28, %29, %cst_12 {dimension_numbers = #tpu.dot_dimension_numbers<[1], [0], [0], [1], [0, 0, 1, 1], [], []>} : vector<8x32xbf16>, vector<32x96xbf16>, vector<8x96xf32> -> vector<8x96xf32>
    %c0_13 = arith.constant 0 : index
    %c0_14 = arith.constant 0 : index
    %31 = vector.load %arg5[%c0_13, %c0_14] : memref<1x96xf32, #tpu.memory_space<vmem>>, vector<1x96xf32>
    %32 = vector.shape_cast %31 : vector<1x96xf32> to vector<96xf32>
    %33 = vector.shape_cast %32 : vector<96xf32> to vector<1x96xf32>
    %34 = vector.broadcast %33 : vector<1x96xf32> to vector<8x96xf32>
    %35 = arith.addf %30, %34 : vector<8x96xf32>
    %36 = arith.truncf %35 : vector<8x96xf32> to vector<8x96xbf16>
    %37 = vector.extract_strided_slice %36 {offsets = [0, 0], sizes = [8, 24], strides = [1, 1]} : vector<8x96xbf16> to vector<8x24xbf16>
    %38 = vector.extract_strided_slice %36 {offsets = [0, 24], sizes = [8, 24], strides = [1, 1]} : vector<8x96xbf16> to vector<8x24xbf16>
    %39 = vector.extract_strided_slice %36 {offsets = [0, 48], sizes = [8, 24], strides = [1, 1]} : vector<8x96xbf16> to vector<8x24xbf16>
    %40 = vector.extract_strided_slice %36 {offsets = [0, 72], sizes = [8, 24], strides = [1, 1]} : vector<8x96xbf16> to vector<8x24xbf16>
    %41 = vector.shape_cast %37 : vector<8x24xbf16> to vector<1x8x24xbf16>
    %42 = vector.shape_cast %38 : vector<8x24xbf16> to vector<1x8x24xbf16>
    %43 = vector.shape_cast %39 : vector<8x24xbf16> to vector<1x8x24xbf16>
    %44 = vector.shape_cast %40 : vector<8x24xbf16> to vector<1x8x24xbf16>
    %45 = tpu.concatenate %41, %42, %43, %44 in 0 : vector<1x8x24xbf16>, vector<1x8x24xbf16>, vector<1x8x24xbf16>, vector<1x8x24xbf16> -> vector<4x8x24xbf16>
    %46 = vector.extract_strided_slice %45 {offsets = [0, 0, 0], sizes = [4, 8, 8], strides = [1, 1, 1]} : vector<4x8x24xbf16> to vector<4x8x8xbf16>
    %47 = vector.extract_strided_slice %45 {offsets = [0, 0, 8], sizes = [4, 8, 8], strides = [1, 1, 1]} : vector<4x8x24xbf16> to vector<4x8x8xbf16>
    %48 = vector.extract_strided_slice %45 {offsets = [0, 0, 16], sizes = [4, 8, 8], strides = [1, 1, 1]} : vector<4x8x24xbf16> to vector<4x8x8xbf16>
    "tpu.trace_start"() <{level = 10 : i32, message = "nqd,nkd->nqk"}> : () -> ()
    %cst_15 = arith.constant dense<0.000000e+00> : vector<4x8x8xf32>
    %49 = tpu.matmul %46, %47, %cst_15 {dimension_numbers = #tpu.dot_dimension_numbers<[2], [2], [1], [1], [0, 0, 0, 1, 1, 1], [0], [0]>} : vector<4x8x8xbf16>, vector<4x8x8xbf16>, vector<4x8x8xf32> -> vector<4x8x8xf32>
    "tpu.trace_stop"() : () -> ()
    %cst_16 = arith.constant dense<0xFF800000> : vector<4x8xf32>
    %50 = vector.multi_reduction <maximumf>, %49, %cst_16 [2] : vector<4x8x8xf32> to vector<4x8xf32>
    %51 = vector.shape_cast %50 : vector<4x8xf32> to vector<4x8x1xf32>
    %52 = vector.broadcast %51 : vector<4x8x1xf32> to vector<4x8x8xf32>
    %53 = arith.subf %49, %52 : vector<4x8x8xf32>
    %54 = math.exp %53 : vector<4x8x8xf32>
    %cst_17 = arith.constant dense<0.000000e+00> : vector<4x8xf32>
    %55 = vector.multi_reduction <add>, %54, %cst_17 [2] : vector<4x8x8xf32> to vector<4x8xf32>
    %56 = vector.shape_cast %55 : vector<4x8xf32> to vector<4x8x1xf32>
    %57 = tpu.reciprocal %56 {approx = true} : vector<4x8x1xf32> -> vector<4x8x1xf32>
    %58 = vector.broadcast %57 : vector<4x8x1xf32> to vector<4x8x8xf32>
    %59 = arith.mulf %54, %58 : vector<4x8x8xf32>
    %60 = arith.truncf %59 : vector<4x8x8xf32> to vector<4x8x8xbf16>
    "tpu.trace_start"() <{level = 10 : i32, message = "nqk,nkd->nqd"}> : () -> ()
    %cst_18 = arith.constant dense<0.000000e+00> : vector<4x8x8xf32>
    %61 = tpu.matmul %60, %48, %cst_18 {dimension_numbers = #tpu.dot_dimension_numbers<[2], [1], [1], [2], [0, 0, 0, 1, 1, 2], [0], [0]>} : vector<4x8x8xbf16>, vector<4x8x8xbf16>, vector<4x8x8xf32> -> vector<4x8x8xf32>
    "tpu.trace_stop"() : () -> ()
    %62 = arith.truncf %61 : vector<4x8x8xf32> to vector<4x8x8xbf16>
    %63 = vector.extract_strided_slice %62 {offsets = [0, 0, 0], sizes = [1, 8, 8], strides = [1, 1, 1]} : vector<4x8x8xbf16> to vector<1x8x8xbf16>
    %64 = vector.shape_cast %63 : vector<1x8x8xbf16> to vector<8x8xbf16>
    %65 = vector.extract_strided_slice %62 {offsets = [1, 0, 0], sizes = [1, 8, 8], strides = [1, 1, 1]} : vector<4x8x8xbf16> to vector<1x8x8xbf16>
    %66 = vector.shape_cast %65 : vector<1x8x8xbf16> to vector<8x8xbf16>
    %67 = vector.extract_strided_slice %62 {offsets = [2, 0, 0], sizes = [1, 8, 8], strides = [1, 1, 1]} : vector<4x8x8xbf16> to vector<1x8x8xbf16>
    %68 = vector.shape_cast %67 : vector<1x8x8xbf16> to vector<8x8xbf16>
    %69 = vector.extract_strided_slice %62 {offsets = [3, 0, 0], sizes = [1, 8, 8], strides = [1, 1, 1]} : vector<4x8x8xbf16> to vector<1x8x8xbf16>
    %70 = vector.shape_cast %69 : vector<1x8x8xbf16> to vector<8x8xbf16>
    %71 = tpu.concatenate %64, %66, %68, %70 in 1 : vector<8x8xbf16>, vector<8x8xbf16>, vector<8x8xbf16>, vector<8x8xbf16> -> vector<8x32xbf16>
    %c0_19 = arith.constant 0 : index
    %c0_20 = arith.constant 0 : index
    %72 = vector.load %arg6[%c0_19, %c0_20] : memref<32x32xbf16, #tpu.memory_space<vmem>>, vector<32x32xbf16>
    %cst_21 = arith.constant dense<0.000000e+00> : vector<8x32xf32>
    %73 = tpu.matmul %71, %72, %cst_21 {dimension_numbers = #tpu.dot_dimension_numbers<[1], [0], [0], [1], [0, 0, 1, 1], [], []>} : vector<8x32xbf16>, vector<32x32xbf16>, vector<8x32xf32> -> vector<8x32xf32>
    %c0_22 = arith.constant 0 : index
    %c0_23 = arith.constant 0 : index
    %74 = vector.load %arg7[%c0_22, %c0_23] : memref<1x32xf32, #tpu.memory_space<vmem>>, vector<1x32xf32>
    %75 = vector.shape_cast %74 : vector<1x32xf32> to vector<32xf32>
    %76 = vector.shape_cast %75 : vector<32xf32> to vector<1x32xf32>
    %77 = vector.broadcast %76 : vector<1x32xf32> to vector<8x32xf32>
    %78 = arith.addf %73, %77 : vector<8x32xf32>
    %79 = arith.addf %78, %1 : vector<8x32xf32>
    %c0_24 = arith.constant 0 : index
    %c0_25 = arith.constant 0 : index
    %80 = vector.load %arg8[%c0_24, %c0_25] : memref<1x32xf32, #tpu.memory_space<vmem>>, vector<1x32xf32>
    %81 = vector.shape_cast %80 : vector<1x32xf32> to vector<32xf32>
    %c0_26 = arith.constant 0 : index
    %c0_27 = arith.constant 0 : index
    %82 = vector.load %arg9[%c0_26, %c0_27] : memref<1x32xf32, #tpu.memory_space<vmem>>, vector<1x32xf32>
    %83 = vector.shape_cast %82 : vector<1x32xf32> to vector<32xf32>
    %cst_28 = arith.constant dense<0.000000e+00> : vector<8xf32>
    %84 = vector.multi_reduction <add>, %79, %cst_28 [1] : vector<8x32xf32> to vector<8xf32>
    %85 = vector.shape_cast %84 : vector<8xf32> to vector<8x1xf32>
    %cst_29 = arith.constant 3.200000e+01 : f32
    %86 = vector.broadcast %cst_29 : f32 to vector<8x1xf32>
    %87 = arith.divf %85, %86 : vector<8x1xf32>
    %88 = vector.broadcast %87 : vector<8x1xf32> to vector<8x32xf32>
    %89 = arith.subf %79, %88 : vector<8x32xf32>
    %90 = arith.mulf %89, %89 : vector<8x32xf32>
    %cst_30 = arith.constant dense<0.000000e+00> : vector<8xf32>
    %91 = vector.multi_reduction <add>, %90, %cst_30 [1] : vector<8x32xf32> to vector<8xf32>
    %92 = vector.shape_cast %91 : vector<8xf32> to vector<8x1xf32>
    %cst_31 = arith.constant 3.200000e+01 : f32
    %93 = vector.broadcast %cst_31 : f32 to vector<8x1xf32>
    %94 = arith.divf %92, %93 : vector<8x1xf32>
    %cst_32 = arith.constant 9.99999997E-7 : f32
    %95 = vector.broadcast %cst_32 : f32 to vector<8x1xf32>
    %96 = arith.addf %94, %95 : vector<8x1xf32>
    %97 = math.rsqrt %96 : vector<8x1xf32>
    %98 = vector.broadcast %97 : vector<8x1xf32> to vector<8x32xf32>
    %99 = arith.mulf %89, %98 : vector<8x32xf32>
    %100 = vector.shape_cast %81 : vector<32xf32> to vector<1x32xf32>
    %101 = vector.broadcast %100 : vector<1x32xf32> to vector<8x32xf32>
    %102 = arith.mulf %99, %101 : vector<8x32xf32>
    %103 = vector.shape_cast %83 : vector<32xf32> to vector<1x32xf32>
    %104 = vector.broadcast %103 : vector<1x32xf32> to vector<8x32xf32>
    %105 = arith.addf %102, %104 : vector<8x32xf32>
    %106 = arith.truncf %105 : vector<8x32xf32> to vector<8x32xbf16>
    %c0_33 = arith.constant 0 : index
    %c0_34 = arith.constant 0 : index
    %107 = vector.load %arg10[%c0_33, %c0_34] : memref<32x64xbf16, #tpu.memory_space<vmem>>, vector<32x64xbf16>
    %cst_35 = arith.constant dense<0.000000e+00> : vector<8x64xf32>
    %108 = tpu.matmul %106, %107, %cst_35 {dimension_numbers = #tpu.dot_dimension_numbers<[1], [0], [0], [1], [0, 0, 1, 1], [], []>} : vector<8x32xbf16>, vector<32x64xbf16>, vector<8x64xf32> -> vector<8x64xf32>
    %c0_36 = arith.constant 0 : index
    %c0_37 = arith.constant 0 : index
    %109 = vector.load %arg11[%c0_36, %c0_37] : memref<1x64xf32, #tpu.memory_space<vmem>>, vector<1x64xf32>
    %110 = vector.shape_cast %109 : vector<1x64xf32> to vector<64xf32>
    %111 = vector.shape_cast %110 : vector<64xf32> to vector<1x64xf32>
    %112 = vector.broadcast %111 : vector<1x64xf32> to vector<8x64xf32>
    %113 = arith.addf %108, %112 : vector<8x64xf32>
    %cst_38 = arith.constant 5.000000e-01 : f32
    %114 = vector.broadcast %cst_38 : f32 to vector<8x64xf32>
    %115 = arith.mulf %114, %113 : vector<8x64xf32>
    %116 = arith.mulf %113, %113 : vector<8x64xf32>
    %117 = arith.mulf %116, %113 : vector<8x64xf32>
    %cst_39 = arith.constant 4.471500e-02 : f32
    %118 = vector.broadcast %cst_39 : f32 to vector<8x64xf32>
    %119 = arith.mulf %118, %117 : vector<8x64xf32>
    %120 = arith.addf %113, %119 : vector<8x64xf32>
    %cst_40 = arith.constant 0.797884583 : f32
    %121 = vector.broadcast %cst_40 : f32 to vector<8x64xf32>
    %122 = arith.mulf %121, %120 : vector<8x64xf32>
    %123 = math.tanh %122 : vector<8x64xf32>
    %cst_41 = arith.constant 1.000000e+00 : f32
    %124 = vector.broadcast %cst_41 : f32 to vector<8x64xf32>
    %125 = arith.addf %124, %123 : vector<8x64xf32>
    %126 = arith.mulf %115, %125 : vector<8x64xf32>
    %127 = arith.truncf %126 : vector<8x64xf32> to vector<8x64xbf16>
    %c0_42 = arith.constant 0 : index
    %c0_43 = arith.constant 0 : index
    %128 = vector.load %arg12[%c0_42, %c0_43] : memref<64x32xbf16, #tpu.memory_space<vmem>>, vector<64x32xbf16>
    %cst_44 = arith.constant dense<0.000000e+00> : vector<8x32xf32>
    %129 = tpu.matmul %127, %128, %cst_44 {dimension_numbers = #tpu.dot_dimension_numbers<[1], [0], [0], [1], [0, 0, 1, 1], [], []>} : vector<8x64xbf16>, vector<64x32xbf16>, vector<8x32xf32> -> vector<8x32xf32>
    %c0_45 = arith.constant 0 : index
    %c0_46 = arith.constant 0 : index
    %130 = vector.load %arg13[%c0_45, %c0_46] : memref<1x32xf32, #tpu.memory_space<vmem>>, vector<1x32xf32>
    %131 = vector.shape_cast %130 : vector<1x32xf32> to vector<32xf32>
    %132 = vector.shape_cast %131 : vector<32xf32> to vector<1x32xf32>
    %133 = vector.broadcast %132 : vector<1x32xf32> to vector<8x32xf32>
    %134 = arith.addf %129, %133 : vector<8x32xf32>
    %135 = arith.addf %134, %79 : vector<8x32xf32>
    %c0_47 = arith.constant 0 : index
    %c0_48 = arith.constant 0 : index
    %c0_49 = arith.constant 0 : index
    %136 = vector.load %arg14[%c0_47, %c0_48, %c0_49] : memref<1x8x32xf32, #tpu.memory_space<vmem>>, vector<1x8x32xf32>
    %137 = vector.shape_cast %136 : vector<1x8x32xf32> to vector<8x32xf32>
    %138 = vector.shape_cast %135 : vector<8x32xf32> to vector<1x8x32xf32>
    tpu.vector_store %arg14[%c0_47, %c0_48, %c0_49], %138 {strides = array<i32>} : memref<1x8x32xf32, #tpu.memory_space<vmem>>, vector<1x8x32xf32>,
    return
  }
  func.func @transform_0(%arg0: i32) -> (i32, i32, i32) {
    %c0_i32 = arith.constant 0 : i32
    %c0_i32_0 = arith.constant 0 : i32
    %c0_i32_1 = arith.constant 0 : i32
    return %arg0, %c0_i32, %c0_i32_0 : i32, i32, i32
  }
  func.func @transform_1(%arg0: i32) -> (i32, i32) {
    %c0_i32 = arith.constant 0 : i32
    %c0_i32_0 = arith.constant 0 : i32
    %c0_i32_1 = arith.constant 0 : i32
    return %c0_i32, %c0_i32_0 : i32, i32
  }
  func.func @transform_2(%arg0: i32) -> (i32, i32) {
    %c0_i32 = arith.constant 0 : i32
    %c0_i32_0 = arith.constant 0 : i32
    %c0_i32_1 = arith.constant 0 : i32
    return %c0_i32, %c0_i32_0 : i32, i32
  }
  func.func @transform_3(%arg0: i32) -> (i32, i32) {
    %c0_i32 = arith.constant 0 : i32
    %c0_i32_0 = arith.constant 0 : i32
    %c0_i32_1 = arith.constant 0 : i32
    return %c0_i32, %c0_i32_0 : i32, i32
  }
  func.func @transform_4(%arg0: i32) -> (i32, i32) {
    %c0_i32 = arith.constant 0 : i32
    %c0_i32_0 = arith.constant 0 : i32
    %c0_i32_1 = arith.constant 0 : i32
    return %c0_i32, %c0_i32_0 : i32, i32
  }
  func.func @transform_5(%arg0: i32) -> (i32, i32) {
    %c0_i32 = arith.constant 0 : i32
    %c0_i32_0 = arith.constant 0 : i32
    %c0_i32_1 = arith.constant 0 : i32
    return %c0_i32, %c0_i32_0 : i32, i32
  }
  func.func @transform_6(%arg0: i32) -> (i32, i32) {
    %c0_i32 = arith.constant 0 : i32
    %c0_i32_0 = arith.constant 0 : i32
    %c0_i32_1 = arith.constant 0 : i32
    return %c0_i32, %c0_i32_0 : i32, i32
  }
  func.func @transform_7(%arg0: i32) -> (i32, i32) {
    %c0_i32 = arith.constant 0 : i32
    %c0_i32_0 = arith.constant 0 : i32
    %c0_i32_1 = arith.constant 0 : i32
    return %c0_i32, %c0_i32_0 : i32, i32
  }
  func.func @transform_8(%arg0: i32) -> (i32, i32) {
    %c0_i32 = arith.constant 0 : i32
    %c0_i32_0 = arith.constant 0 : i32
    %c0_i32_1 = arith.constant 0 : i32
    return %c0_i32, %c0_i32_0 : i32, i32
  }
  func.func @transform_9(%arg0: i32) -> (i32, i32) {
    %c0_i32 = arith.constant 0 : i32
    %c0_i32_0 = arith.constant 0 : i32
    %c0_i32_1 = arith.constant 0 : i32
    return %c0_i32, %c0_i32_0 : i32, i32
  }
  func.func @transform_10(%arg0: i32) -> (i32, i32) {
    %c0_i32 = arith.constant 0 : i32
    %c0_i32_0 = arith.constant 0 : i32
    %c0_i32_1 = arith.constant 0 : i32
    return %c0_i32, %c0_i32_0 : i32, i32
  }
  func.func @transform_11(%arg0: i32) -> (i32, i32) {
    %c0_i32 = arith.constant 0 : i32
    %c0_i32_0 = arith.constant 0 : i32
    %c0_i32_1 = arith.constant 0 : i32
    return %c0_i32, %c0_i32_0 : i32, i32
  }
  func.func @transform_12(%arg0: i32) -> (i32, i32) {
    %c0_i32 = arith.constant 0 : i32
    %c0_i32_0 = arith.constant 0 : i32
    %c0_i32_1 = arith.constant 0 : i32
    return %c0_i32, %c0_i32_0 : i32, i32
  }
  func.func @transform_13(%arg0: i32) -> (i32, i32, i32) {
    %c0_i32 = arith.constant 0 : i32
    %c0_i32_0 = arith.constant 0 : i32
    %c0_i32_1 = arith.constant 0 : i32
    return %arg0, %c0_i32, %c0_i32_0 : i32, i32, i32
  }
}

</mosaic_0001>

<bundles_post_ra>
// kernel: tpu_custom_call.1
= control target key start
LH: loop header
LB: loop body
LE: loop exit
PB: predicated region body
PF: predicated region fallthrough
CT: control target
= control target key end

     0   :  { %s2354_s0 = inlined_call_operand.vmem [shape: f32[2,8,32], index: 0, kind: input, shape index: {}]   ;;  %s2355_s1 = inlined_call_operand.vmem [shape: f32[1,32], index: 1, kind: input, shape index: {}]   ;;  %s2356_s2 = inlined_call_operand.vmem [shape: f32[1,32], index: 2, kind: input, shape index: {}]   ;;  %s2357_s3 = inlined_call_operand.vmem [shape: bf16[32,96], index: 3, kind: input, shape index: {}]   ;;  %s2358_s4 = inlined_call_operand.hbm [shape: f32[1,96], index: 4, kind: input, shape index: {}]   ;;  %s2359_s5 = inlined_call_operand.vmem [shape: bf16[32,32], index: 5, kind: input, shape index: {}]   ;;  %s2360_s6 = inlined_call_operand.hbm [shape: f32[1,32], index: 6, kind: input, shape index: {}]   ;;  %s2361_s7 = inlined_call_operand.hbm [shape: f32[1,32], index: 7, kind: input, shape index: {}]   ;;  %s2362_s8 = inlined_call_operand.hbm [shape: f32[1,32], index: 8, kind: input, shape index: {}]   ;;  %s2363_s9 = inlined_call_operand.vmem [shape: bf16[32,64], index: 9, kind: input, shape index: {}]   ;;  %s2364_s10 = inlined_call_operand.vmem [shape: f32[1,64], index: 10, kind: input, shape index: {}]   ;;  %s2365_s11 = inlined_call_operand.vmem [shape: bf16[64,32], index: 11, kind: input, shape index: {}]   ;;  %s2366_s12 = inlined_call_operand.vmem [shape: f32[1,32], index: 12, kind: input, shape index: {}]   ;;  %s2367_s13 = inlined_call_operand.hbm [shape: f32[2,8,32], index: 13, kind: output, shape index: {}]  }
   0x1   :  { %2378 = sst [smem:[#allocation21_spill]] %s2367_s13 }
   0x2   :  { %18 = vsyncpa [#allocation3], 0 }
   0x3   :  { %19 = vsyncpa [#allocation6], 0 }
   0x4   :  { %20 = vsyncpa [#allocation9], 0 }
   0x5   :  { %21 = vsyncpa [#allocation4], 0 }
   0x6   :  { %23 = vsyncpa [#allocation4 + $0x1], 0  ;;  %s1979_s25 = smov 0   ;;  %s1981_s26 = smov 0  }
   0x7   :  { %s1983_s27 = smov 0   ;;  %s1985_s28 = smov 0  }
   0x8 LB: > { %2379 = sst [smem:[#allocation15_spill]] %s1880_s25  ;;  %s2000_s29 = sadd.s32 4294967295, %s1892_s28   ;;  %s1892_s28 = sphi %s1985_s28, %s2404_s28   ;;  %s1888_s27 = sphi %s1983_s27, %s2406_s27   ;;  %s1884_s26 = sphi %s1981_s26, %s2408_s26   ;;  %s1880_s25 = sphi %s1979_s25, %s2407_s25  }
   0x9   : > { %2380 = sst [smem:[#allocation16_spill]] %s1888_s27  ;;  %s1422_s30 = sadd.s32 4294967294, %s1892_s28  }
   0xa   : > { %2381 = sst [smem:[#allocation17_spill]] %s1892_s28  ;;  %s2004_s14 = sadd.s32 1, %s1892_s28  }
   0xb   : > { %2382 = sst [smem:[#allocation18_spill]] %s2004_s14  ;;  %s314_s15 = sadd.s32 1, %s1888_s27 }
   0xc   : > { %s311_s16 = ssub.s32 %s1892_s28, %s2004_s14  ;;  %p324_p0 = scmp.ne.s32.totalorder %s1888_s27, %s1884_s26 }
   0xd   : > { %p312_p1 = scmp.eq.s32.totalorder %s311_s16, 0  ;;  %p325_p2 = scmp.eq.s32.totalorder %s2000_s29, 1 }
   0xe   : > { %p330_p3 = scmp.ne.s32.totalorder %s1884_s26, %s1880_s25  ;;  %p331_p4 = scmp.eq.s32.totalorder %s1422_s30, 1 }
   0xf   : > { %s2015_s17 = scalar_select %p312_p1, %s1888_s27, %s314_s15  }
  0x10   : > { %p2017_p5 = por %p325_p2, %p324_p0  ;;  %p2021_p6 = por %p331_p4, %p330_p3 }
  0x11   : > { %2383 = sst [smem:[#allocation19_spill]] %s2015_s17  ;;  %p1423_p7 = scmp.ge.s32.totalorder %s1892_s28, 1 }
  0x12   : > { %s2384_s18 = scalar_select %p2017_p5, 1, 0 }
  0x13   : > { %s2385_s19 = scalar_select %p2021_p6, 1, 0 }
  0x14   : > { %p338_p8 = scmp.lt.s32.totalorder %s1892_s28, 3  ;;  %p2373_p9 = scmp.eq.s32.totalorder %s2000_s29, 0 }
  0x15   : > { %2386 = sst [smem:[#allocation20_spill]] %s2385_s19  ;;  %s1894_s21 = smov [#allocation5]  }
  0x16   : > { %p2028_p10 = pnand %p1423_p7, %p338_p8  ;;  %s374_s22 = sshll.u32 %s1894_s21, 4  ;;  %s375_s22 = int_to_ptr.vmem [resolvable:$true] %s374_s22 }
  0x17   : > { %s1895_s23 = smov [#allocation2]   ;;  %s1896_s15 = smov [#allocation7]  }
  0x18   : > { %s2387_s20 = scalar_select %p2028_p10, 1, 0 }
  0x19   : > { %p1602_p11 = pneg %p2028_p10  ;;  %s360_s24 = sshll.u32 %s1895_s23, 4  ;;  %s2040_s24 = int_to_ptr.vmem [resolvable:$true] %s360_s24 }
  0x1a   : > { %s385_s16 = sshll.u32 %s1896_s15, 4  ;;  %s1706_s21 = scalar_lea.hbm %s2360_s6, 16  ;;  %s2042_s16 = int_to_ptr.vmem [resolvable:$true] %s385_s16 }
  0x1b   : > { %p2036_p12 = pnand %p2373_p9, %p1602_p11  ;;  %p1707_p13 = scmp.ne.s32.totalorder %s2360_s6, %s1706_s21 }
  0x1c   : > { %p1713_p3 = scmp.lt.u32.totalorder %s1706_s21, %s2360_s6 }
  0x1d   : > { %p2052_p0 = pneg %p2036_p12 }
  0x1f   : > { %p1709_p1 = pnand %p2052_p0, %p1707_p13 }
  0x21   : > { %p1710_p2 = pneg %p1709_p1 }
  0x23   : > { %p1715_p4 = pnand %p1713_p3, %p1710_p2 }
  0x25   : > { %1718 = shalt.err (!%p1715_p4)
}
  0x26   : > { %s1719_s27 = scalar_lea.vmem %s375_s22, 16  ;;  %s1726_s14 = scalar_lea.vmem %s375_s22, 32 }
  0x27   : > { %p1720_p7 = scmp.ne.s32.totalorder %s375_s22, %s1719_s27  ;;  %p1727_p9 = scmp.lt.s32.totalorder %s375_s22, %s375_s22 }
  0x28   : > { %p1728_p6 = scmp.lt.s32.totalorder %s1726_s14, %s1719_s27 }
  0x29   : > { %p1722_p8 = pnand %p1720_p7, %p2052_p0 }
  0x2a   : > { %p1729_p5 = por %p1728_p6, %p1727_p9 }
  0x2b   : > { %p1723_p11 = pneg %p1722_p8 }
  0x2d   : > { %p1730_p10 = pnand %p1729_p5, %p1723_p11 }
  0x2f   : > { %1733 = shalt.err (!%p1730_p10)
}
  0x30   : > { %1608 = dma.hbm_to_vmem [thread:$0]  (!%p2036_p12), %s2360_s6, 16, %s375_s22, [#allocation6]  }
  0x31   : > { %s1734_s15 = scalar_lea.hbm %s2358_s4, 16 }
  0x32   : > { %p1735_p13 = scmp.ne.s32.totalorder %s2358_s4, %s1734_s15  ;;  %p1741_p5 = scmp.lt.u32.totalorder %s1734_s15, %s2358_s4 }
  0x34   : > { %p1737_p1 = pnand %p1735_p13, %p2052_p0 }
  0x36   : > { %p1738_p6 = pneg %p1737_p1 }
  0x38   : > { %p1743_p9 = pnand %p1741_p5, %p1738_p6 }
  0x3a   : > { %1746 = shalt.err (!%p1743_p9)
}
  0x3b   : > { %s1747_s22 = scalar_lea.vmem %s2040_s24, 16  ;;  %s1754_s13 = scalar_lea.vmem %s2040_s24, 32 }
  0x3c   : > { %p1748_p10 = scmp.ne.s32.totalorder %s2040_s24, %s1747_s22  ;;  %p1755_p4 = scmp.lt.s32.totalorder %s2040_s24, %s2040_s24 }
  0x3d   : > { %p1756_p7 = scmp.lt.s32.totalorder %s1754_s13, %s1747_s22 }
  0x3e   : > { %p1750_p2 = pnand %p1748_p10, %p2052_p0 }
  0x3f   : > { %p1757_p8 = por %p1756_p7, %p1755_p4 }
  0x40   : > { %p1751_p3 = pneg %p1750_p2 }
  0x42   : > { %p1758_p11 = pnand %p1757_p8, %p1751_p3 }
  0x44   : > { %1761 = shalt.err (!%p1758_p11)
}
  0x45   : > { %1605 = dma.hbm_to_vmem [thread:$0]  (!%p2036_p12), %s2358_s4, 16, %s2040_s24, [#allocation3]  }
  0x46   : > { %s1762_s21 = scalar_lea.hbm %s2361_s7, 16 }
  0x47   : > { %p1763_p13 = scmp.ne.s32.totalorder %s2361_s7, %s1762_s21  ;;  %p1769_p5 = scmp.lt.u32.totalorder %s1762_s21, %s2361_s7 }
  0x49   : > { %p1765_p1 = pnand %p1763_p13, %p2052_p0 }
  0x4b   : > { %p1766_p6 = pneg %p1765_p1 }
  0x4d   : > { %p1771_p9 = pnand %p1769_p5, %p1766_p6 }
  0x4f   : > { %1774 = shalt.err (!%p1771_p9)
}
  0x50   : > { %s1775_s24 = scalar_lea.vmem %s2042_s16, 16  ;;  %s1782_s13 = scalar_lea.vmem %s2042_s16, 32 }
  0x51   : > { %p1776_p10 = scmp.ne.s32.totalorder %s2042_s16, %s1775_s24  ;;  %p1783_p4 = scmp.lt.s32.totalorder %s2042_s16, %s2042_s16 }
  0x52   : > { %p1784_p7 = scmp.lt.s32.totalorder %s1782_s13, %s1775_s24 }
  0x53   : > { %p1778_p2 = pnand %p1776_p10, %p2052_p0 }
  0x54   : > { %p1785_p8 = por %p1784_p7, %p1783_p4 }
  0x55   : > { %p1779_p3 = pneg %p1778_p2 }
  0x57   : > { %p1786_p11 = pnand %p1785_p8, %p1779_p3 }
  0x59   : > { %1789 = shalt.err (!%p1786_p11)
}
  0x5a   : > { %1611 = dma.hbm_to_vmem [thread:$0]  (!%p2036_p12), %s2361_s7, 16, %s2042_s16, [#allocation6]  }
  0x5b   : > { %s1897_s19 = smov [#allocation8]   ;;  %s1790_s27 = scalar_lea.hbm %s2362_s8, 16 }
  0x5c   : > { %s396_s25 = sshll.u32 %s1897_s19, 4  ;;  %p1791_p13 = scmp.ne.s32.totalorder %s2362_s8, %s1790_s27  ;;  %s397_s25 = int_to_ptr.vmem [resolvable:$true] %s396_s25 }
  0x5d   : > { %p1797_p5 = scmp.lt.u32.totalorder %s1790_s27, %s2362_s8 }
  0x5e   : > { %p1793_p1 = pnand %p1791_p13, %p2052_p0 }
  0x60   : > { %p1794_p6 = pneg %p1793_p1 }
  0x62   : > { %p1799_p9 = pnand %p1797_p5, %p1794_p6 }
  0x64   : > { %1802 = shalt.err (!%p1799_p9)
}
  0x65   : > { %s1803_s16 = scalar_lea.vmem %s397_s25, 16  ;;  %s1810_s28 = scalar_lea.vmem %s397_s25, 32 }
  0x66   : > { %p1804_p10 = scmp.ne.s32.totalorder %s397_s25, %s1803_s16  ;;  %p1811_p4 = scmp.lt.s32.totalorder %s397_s25, %s397_s25 }
  0x67   : > { %p1812_p7 = scmp.lt.s32.totalorder %s1810_s28, %s1803_s16 }
  0x68   : > { %p1806_p2 = pnand %p1804_p10, %p2052_p0 }
  0x69   : > { %p1813_p8 = por %p1812_p7, %p1811_p4 }
  0x6a   : > { %p1807_p3 = pneg %p1806_p2 }
  0x6c   : > { %p1814_p11 = pnand %p1813_p8, %p1807_p3 }
  0x6e   : > { %1817 = shalt.err (!%p1814_p11)
}
  0x6f   : > { %1614 = dma.hbm_to_vmem [thread:$0]  (!%p2036_p12), %s2362_s8, 16, %s397_s25, [#allocation9]  }
  0x70   : > { %p2390_p13 = scmp.ne.s32.totalorder %s2387_s20, 0 }
  0x71   : > { %p2391_p1 = scmp.eq.s32.totalorder (!%p2390_p13), %s2000_s29, 0 }
  0x72   : > { %428 = sbr.rel (%p2390_p13) target bundleno = 2774 (0xad6), region = 72 }
  0x79   : > { %1863 = dma.done.wait (%p2391_p1), [#allocation3], 16   ;;  %p2392_p0 = pmov %p2391_p1 }
  0x7b   : > { %1865 = vsyncadd (%p2392_p0), [#allocation3], 4294967280  ;;  %p2393_p6 = pmov %p2392_p0 }
  0x7c   : > { %p2394_p5 = pmov %p2392_p0 }
  0x7d   : > { %1867 = dma.done.wait (%p2393_p6), [#allocation6], 32  }
  0x7e   : > { %1869 = vsyncadd (%p2394_p5), [#allocation6], 4294967264  ;;  %p2395_p9 = pmov %p2392_p0 }
  0x7f   : > { %p2396_p12 = pmov %p2392_p0 }
  0x80   : > { %1871 = dma.done.wait (%p2395_p9), [#allocation9], 16  }
  0x81   : > { %1873 = vsyncadd (%p2396_p12), [#allocation9], 4294967280  ;;  %p483_p10 = scmp.lt.s32.totalorder %s2000_s29, 1  ;;  %vm491_vm0 = vcmask 261120   ;;  %v1674_v7 = vld [vmem:[%s2357_s3] sm:$0xff]   ;;  %v1898_v8 = vmov 0.0  }
  0x82   : > { %1500 = vmatprep.subr.bf16.mxu0 %v1898_v8  ;;  %vm1899_vm1 = vmmov 0   ;;  %v1675_v9 = vld [vmem:[%s2357_s3 + $0x8] sm:$0xff]   ;;  %1508 = vmatprep.subr.bf16.mxu1 %v1898_v8  ;;  %v1436_v14 = vld [vmem:[%s2355_s1] ss:$0 sm:$0xff]  ;;  %s1900_s17 = smov 56   ;;  %s1901_s19 = smov 104  }
  0x83   : > { %s484_s20 = scalar_select %p483_p10, %s2000_s29, 1  ;;  %1504 = vmatprep.mubr.msk.bf16.mxu0 %vm1899_vm1, %v1898_v8  ;;  %1501 = vmatpush3.bf16.msra.mxu0 %v1674_v7  ;;  %v1437_v16 = vld [vmem:[%s2356_s2] ss:$0 sm:$0xff]  ;;  %vm597_vm2 = vcmask 64512   ;;  %vm841_vm3 = vcmask 1043456   ;;  %vm1045_vm4 = vcmask 130048  }
  0x84   : > { %1502 = vmatprep.subr.bf16.mxu0 %v1898_v8  ;;  %1510 = vmatprep.mubr.msk.bf16.mxu1 %vm1899_vm1, %v1898_v8  ;;  %v1438_v20 = vld [vmem:[#allocation2] ss:$0 sm:$0xff]  ;;  %s1904_s23 = smov 112   ;;  %s1905_s14 = smov 8   ;;  %vm1048_vm5 = vcmask 195584   ;;  %vm1262_vm6 = vcmask 523264  }
  0x85   : > { %s1435_s30 = sshll.u32 %s484_s20, 3  ;;  %s1902_s20 = smov 80  }
  0x86   : > { %s486_s21 = scalar_lea.vmem %s2354_s0, %s1435_s30  ;;  %s1903_s30 = smov 120  }
  0x87   : > { %v2153_v0 = vld [vmem:[%s486_s21] sm:$0xff]  ;;  %1503 = vmatpush3.bf16.msra.mxu0 %v1675_v9  ;;  %s1906_s22 = smov 16   ;;  %s1907_s24 = smov 24  }
  0x88   : > { %v492_v1 = vsel %vm491_vm0, %v2153_v0, 0.0  ;;  %1514 = vmatprep.subr.bf16.mxu0 %v1898_v8  ;;  %s2397_s25 = sld [smem:[#allocation21_spill]]  ;;  %p2399_p3 = scmp.ne.s32.totalorder %s2384_s18, 0 }
  0x89   : > { %493 = vadd.xlane.f32.xlu0 %v492_v1 }
  0x8e   : > { %s2398_s21 = smov %s2397_s25 }
 0x116   : > { %v494_v2 = vpop.xlane.xlu0 %493 }
 0x117   : > { %v496_v3 = vmul.f32 0.03125, %v494_v2 }
 0x119   : > { %v497_v4 = vsub.f32 %v2153_v0, %v496_v3 }
 0x11b   : > { %v498_v5 = vmul.f32 %v497_v4, %v497_v4 }
 0x11d   : > { %v499_v6 = vsel %vm491_vm0, %v498_v5, 0.0 }
 0x11e   : > { %500 = vadd.xlane.f32.xlu0 %v499_v6 }
 0x1ab   : > { %v501_v10 = vpop.xlane.xlu0 %500 }
 0x1ac   : > { %v502_v11 = vmul.f32 0.03125, %v501_v10 }
 0x1ae   : > { %v503_v12 = vadd.f32 1e-06, %v502_v11 }
 0x1b0   : > { %1684 = vrsqrt.f32 %v503_v12 }
 0x1ba   : > { %v1685_v13 = vpop.eup %1684 }
 0x1bb   : > { %v505_v15 = vmul.f32 %v1685_v13, %v497_v4 }
 0x1bd   : > { %v512_v17 = vmul.f32 %v1436_v14, %v505_v15 }
 0x1bf   : > { %v519_v18 = vadd.f32 %v1437_v16, %v512_v17 }
 0x1c1   : > { %v520_v19 = vpack.c.bf16 %v519_v18, %v519_v18 }
 0x1c3   : > { %1505 = vmatmul.mubr.msk.bf16.vlgmr.msra.gmra.mrb[0].mxu0 %vm491_vm0, %v520_v19 }
 0x1c4   : > { %1516 = vmatprep.mubr.msk.bf16.mxu0 %vm1899_vm1, %v1898_v8 }
 0x296   : > { %v581_v21 = vpop.f32.mrb[0].mxu0 }
 0x297   : > { %v582_v22 = vadd.f32 %v1438_v20, %v581_v21  ;;  %v1506_v23 = vpop.f32.mrb[1].mxu0 }
 0x298   : > { %v584_v24 = vpop.f32.mrb[2].mxu0 }
 0x299   : > { %v2182_v25 = vpack.c.bf16 %v582_v22, %v582_v22  ;;  %v1507_v26 = vpop.f32.mrb[3].mxu0 }
 0x29b   : > { %593 = vrot.lane.b32.xlu0 %v2182_v25, %s1900_s17  ;;  %589 = vrot.lane.b32.xlu1 %v2182_v25, %s1901_s19  ;;  %s1467_s17 = sshll.u32 %s2000_s29, 7 }
 0x29c   : > { %s2311_s15 = scalar_lea.hbm %s2397_s25, %s1467_s17 }
 0x29f   : > { %591 = vrot.lane.b32.xlu1 %v2182_v25, %s1902_s20 }
 0x2a3   : > { %595 = vrot.lane.b32.xlu1 %v2182_v25, %s1903_s30 }
 0x30d   : > { %v2188_v27 = vpop.permute.xlu1 %589  ;;  %v2194_v29 = vpop.permute.xlu0 %593 }
 0x30e   : > { %644 = vrot.lane.b32.xlu1 %v2188_v27, %s1903_s30 }
 0x311   : > { %v2191_v28 = vpop.permute.xlu1 %591 }
 0x312   : > { %692 = vrot.lane.b32.xlu1 %v2191_v28, %s1903_s30 }
 0x315   : > { %v596_v30 = vpop.permute.xlu1 %595 }
 0x316   : > { %740 = vrot.lane.b32.xlu1 %v2194_v29, %s1903_s30  ;;  %v602_v31 = vsel %vm597_vm2, %v596_v30, 0 }
 0x317   : > { %1509 = vmatpush3.bf16.xpose.msra.mxu1 %v602_v31 }
 0x318   : > { %1520 = vmatprep.subr.bf16.mxu1 %v1898_v8 }
 0x31e   : > { %1511 = vmatmul.mubr.msk.bf16.vlgmr.msra.gmra.mrb[0].mxu1 %vm597_vm2, %v2182_v25 }
 0x31f   : > { %1522 = vmatprep.mubr.msk.bf16.mxu1 %vm1899_vm1, %v1898_v8 }
 0x380   : > { %v645_v32 = vpop.permute.xlu1 %644 }
 0x381   : > { %v650_v33 = vsel %vm597_vm2, %v645_v32, 0 }
 0x382   : > { %1515 = vmatpush3.bf16.xpose.msra.mxu0 %v650_v33 }
 0x383   : > { %1526 = vmatprep.subr.bf16.mxu0 %v1898_v8 }
 0x384   : > { %v693_v34 = vpop.permute.xlu1 %692 }
 0x385   : > { %v698_v35 = vsel %vm597_vm2, %v693_v34, 0 }
 0x386   : > { %1521 = vmatpush3.bf16.xpose.msra.mxu1 %v698_v35 }
 0x387   : > { %1532 = vmatprep.subr.bf16.mxu1 %v1898_v8 }
 0x388   : > { %v741_v36 = vpop.permute.xlu1 %740 }
 0x389   : > { %v746_v37 = vsel %vm597_vm2, %v741_v36, 0  ;;  %1517 = vmatmul.mubr.msk.bf16.vlgmr.msra.gmra.mrb[4].mxu0 %vm597_vm2, %v2188_v27 }
 0x38a   : > { %1527 = vmatpush3.bf16.xpose.msra.mxu0 %v746_v37  ;;  %1528 = vmatprep.mubr.msk.bf16.mxu0 %vm1899_vm1, %v1898_v8 }
 0x38b   : > { %1538 = vmatprep.subr.bf16.mxu0 %v1898_v8 }
 0x38d   : > { %1523 = vmatmul.mubr.msk.bf16.vlgmr.msra.gmra.mrb[4].mxu1 %vm597_vm2, %v2191_v28 }
 0x38e   : > { %1534 = vmatprep.mubr.msk.bf16.mxu1 %vm1899_vm1, %v1898_v8 }
 0x391   : > { %1529 = vmatmul.mubr.msk.bf16.vlgmr.msra.gmra.mrb[8].mxu0 %vm597_vm2, %v2194_v29 }
 0x392   : > { %1540 = vmatprep.mubr.msk.bf16.mxu0 %vm1899_vm1, %v1898_v8 }
 0x3f1   : > { %v638_v38 = vpop.f32.mrb[0].mxu1 }
 0x3f2   : > { %v1512_v39 = vpop.f32.mrb[1].mxu1  ;;  %v788_v40 = vsel %vm597_vm2, %v638_v38, -inf }
 0x3f3   : > { %789 = vmax.xlane.f32.xlu1 %v788_v40  ;;  %v641_v41 = vpop.f32.mrb[2].mxu1 }
 0x3f4   : > { %v1513_v42 = vpop.f32.mrb[3].mxu1 }
 0x45c   : > { %v686_v43 = vpop.f32.mrb[4].mxu0 }
 0x45d   : > { %v1518_v44 = vpop.f32.mrb[5].mxu0  ;;  %v791_v45 = vsel %vm597_vm2, %v686_v43, -inf }
 0x45e   : > { %792 = vmax.xlane.f32.xlu0 %v791_v45  ;;  %v689_v46 = vpop.f32.mrb[6].mxu0  ;;  %v1676_v44 = vld [vmem:[%s2359_s5] sm:$0xff]   ;;  %v1677_v45 = vld [vmem:[%s2359_s5 + $0x8] sm:$0xff]  }
 0x45f   : > { %v1519_v47 = vpop.f32.mrb[7].mxu0 }
 0x460   : > { %v734_v48 = vpop.f32.mrb[4].mxu1 }
 0x461   : > { %v1524_v49 = vpop.f32.mrb[5].mxu1  ;;  %v794_v50 = vsel %vm597_vm2, %v734_v48, -inf }
 0x462   : > { %795 = vmax.xlane.f32.xlu1 %v794_v50  ;;  %v737_v51 = vpop.f32.mrb[6].mxu1 }
 0x463   : > { %v1525_v52 = vpop.f32.mrb[7].mxu1 }
 0x464   : > { %v782_v53 = vpop.f32.mrb[8].mxu0 }
 0x465   : > { %v1530_v54 = vpop.f32.mrb[9].mxu0  ;;  %v797_v55 = vsel %vm597_vm2, %v782_v53, -inf }
 0x466   : > { %798 = vmax.xlane.f32.xlu0 %v797_v55  ;;  %v785_v56 = vpop.f32.mrb[10].mxu0 }
 0x467   : > { %v1531_v57 = vpop.f32.mrb[11].mxu0 }
 0x473   : > { %836 = vrot.lane.b32.xlu1 %v2182_v25, %s1904_s23 }
 0x480   : > { %v790_v58 = vpop.xlane.xlu1 %789 }
 0x481   : > { %v800_v59 = vsub.f32 %v638_v38, %v790_v58 }
 0x483   : > { %v804_v60 = vmul.f32 1.442695, %v800_v59 }
 0x485   : > { %1686 = vpow2.f32 %v804_v60 }
 0x48f   : > { %v1687_v61 = vpop.eup %1686 }
 0x490   : > { %v812_v62 = vsel %vm597_vm2, %v1687_v61, 0.0 }
 0x497   : > { %813 = vadd.xlane.f32.xlu1 %v812_v62 }
 0x4eb   : > { %v793_v63 = vpop.xlane.xlu0 %792 }
 0x4ec   : > { %v801_v1 = vsub.f32 %v686_v43, %v793_v63 }
 0x4ee   : > { %v806_v2 = vmul.f32 1.442695, %v801_v1 }
 0x4ef   : > { %v796_v3 = vpop.xlane.xlu1 %795 }
 0x4f0   : > { %1688 = vpow2.f32 %v806_v2  ;;  %v802_v4 = vsub.f32 %v734_v48, %v796_v3 }
 0x4f2   : > { %v808_v5 = vmul.f32 1.442695, %v802_v4 }
 0x4f3   : > { %v837_v6 = vpop.permute.xlu1 %836  ;;  %v799_v7 = vpop.xlane.xlu0 %798 }
 0x4f4   : > { %1690 = vpow2.f32 %v808_v5  ;;  %v843_v9 = vsel %vm841_vm3, %v837_v6, 0  ;;  %v803_v10 = vsub.f32 %v782_v53, %v799_v7  ;;  %v1450_v5 = vld [vmem:[#allocation5] ss:$0 sm:$0xff] }
 0x4f5   : > { %1533 = vmatpush3.bf16.msra.mxu1 %v843_v9 }
 0x4f6   : > { %v810_v11 = vmul.f32 1.442695, %v803_v10  ;;  %1544 = vmatprep.subr.bf16.mxu1 %v1898_v8 }
 0x4f8   : > { %1692 = vpow2.f32 %v810_v11 }
 0x4fa   : > { %v1689_v12 = vpop.eup %1688 }
 0x4fb   : > { %v815_v13 = vsel %vm597_vm2, %v1689_v12, 0.0 }
 0x4fc   : > { %816 = vadd.xlane.f32.xlu0 %v815_v13 }
 0x4fe   : > { %v1691_v14 = vpop.eup %1690 }
 0x4ff   : > { %v818_v15 = vsel %vm597_vm2, %v1691_v14, 0.0 }
 0x500   : > { %819 = vadd.xlane.f32.xlu1 %v818_v15 }
 0x502   : > { %v1693_v16 = vpop.eup %1692 }
 0x503   : > { %v821_v17 = vsel %vm597_vm2, %v1693_v16, 0.0 }
 0x504   : > { %822 = vadd.xlane.f32.xlu0 %v821_v17 }
 0x511   : > { %933 = vrot.lane.b32.xlu1 %v2191_v28, %s1904_s23 }
 0x515   : > { %981 = vrot.lane.b32.xlu1 %v2194_v29, %s1904_s23 }
 0x51a   : > { %885 = vrot.lane.b32.xlu0 %v2188_v27, %s1904_s23 }
 0x524   : > { %v814_v18 = vpop.xlane.xlu1 %813 }
 0x525   : > { %1694 = vrcp.f32 %v814_v18 }
 0x52f   : > { %v1695_v19 = vpop.eup %1694 }
 0x530   : > { %v828_v20 = vmul.f32 %v1695_v19, %v1687_v61  ;;  %v1678_v19 = vld [vmem:[%s2363_s9] sm:$0xff]  }
 0x532   : > { %v832_v21 = vpack.c.bf16 %v828_v20, %v828_v20 }
 0x534   : > { %1535 = vmatmul.mubr.msk.bf16.vlgmr.msra.gmra.mrb[8].mxu1 %vm597_vm2, %v832_v21 }
 0x535   : > { %1546 = vmatprep.mubr.msk.bf16.mxu1 %vm1899_vm1, %v1898_v8 }
 0x589   : > { %v817_v22 = vpop.xlane.xlu0 %816 }
 0x58a   : > { %1696 = vrcp.f32 %v817_v22 }
 0x58d   : > { %v820_v23 = vpop.xlane.xlu1 %819 }
 0x58e   : > { %1698 = vrcp.f32 %v820_v23 }
 0x591   : > { %v934_v24 = vpop.permute.xlu1 %933  ;;  %v823_v25 = vpop.xlane.xlu0 %822 }
 0x592   : > { %v939_v26 = vsel %vm841_vm3, %v934_v24, 0  ;;  %1700 = vrcp.f32 %v823_v25  ;;  %v1454_v24 = vld [vmem:[#allocation7] ss:$0 sm:$0xff] }
 0x593   : > { %1545 = vmatpush3.bf16.msra.mxu1 %v939_v26  ;;  %v1455_v26 = vld [vmem:[#allocation8] ss:$0 sm:$0xff] }
 0x594   : > { %v1697_v27 = vpop.eup %1696  ;;  %1556 = vmatprep.subr.bf16.mxu1 %v1898_v8 }
 0x595   : > { %v829_v28 = vmul.f32 %v1697_v27, %v1689_v12  ;;  %v886_v29 = vpop.permute.xlu0 %885  ;;  %v982_v31 = vpop.permute.xlu1 %981 }
 0x596   : > { %v891_v30 = vsel %vm841_vm3, %v886_v29, 0  ;;  %v987_v35 = vsel %vm841_vm3, %v982_v31, 0  ;;  %v1681_v31 = vld [vmem:[%s2365_s11 + $0x8] sm:$0xff]  }
 0x597   : > { %1539 = vmatpush3.bf16.msra.mxu0 %v891_v30  ;;  %v833_v32 = vpack.c.bf16 %v829_v28, %v829_v28  ;;  %v1680_v30 = vld [vmem:[%s2365_s11] sm:$0xff]  }
 0x598   : > { %v1699_v33 = vpop.eup %1698  ;;  %1550 = vmatprep.subr.bf16.mxu0 %v1898_v8 }
 0x599   : > { %v830_v34 = vmul.f32 %v1699_v33, %v1691_v14  ;;  %v1683_v33 = vld [vmem:[%s2365_s11 + $0x18] sm:$0xff]  }
 0x59a   : > { %1541 = vmatmul.mubr.msk.bf16.vlgmr.msra.gmra.mrb[12].mxu0 %vm597_vm2, %v833_v32  ;;  %v1682_v32 = vld [vmem:[%s2365_s11 + $0x10] sm:$0xff]  }
 0x59b   : > { %1551 = vmatpush3.bf16.msra.mxu0 %v987_v35  ;;  %v834_v36 = vpack.c.bf16 %v830_v34, %v830_v34  ;;  %1552 = vmatprep.mubr.msk.bf16.mxu0 %vm1899_vm1, %v1898_v8  ;;  %v1456_v34 = vld [vmem:[%s2364_s10] ss:$0 sm:$0xff] }
 0x59c   : > { %v1701_v37 = vpop.eup %1700  ;;  %1564 = vmatprep.subr.bf16.mxu0 %v1898_v8 }
 0x59d   : > { %v831_v38 = vmul.f32 %v1701_v37, %v1693_v16  ;;  %1547 = vmatmul.mubr.msk.bf16.vlgmr.msra.gmra.mrb[12].mxu1 %vm597_vm2, %v834_v36 }
 0x59e   : > { %1560 = vmatprep.mubr.msk.bf16.mxu1 %vm1899_vm1, %v1898_v8  ;;  %1557 = vmatpush3.bf16.msra.mxu1 %v1676_v44 }
 0x59f   : > { %v835_v39 = vpack.c.bf16 %v831_v38, %v831_v38  ;;  %1558 = vmatprep.subr.bf16.mxu1 %v1898_v8 }
 0x5a2   : > { %1553 = vmatmul.mubr.msk.bf16.vlgmr.msra.gmra.mrb[16].mxu0 %vm597_vm2, %v835_v39  ;;  %1559 = vmatpush3.bf16.msra.mxu1 %v1677_v45 }
 0x5a3   : > { %1568 = vmatprep.mubr.msk.bf16.mxu0 %vm1899_vm1, %v1898_v8  ;;  %1572 = vmatprep.subr.bf16.mxu1 %v1898_v8 }
 0x5a4   : > { %1565 = vmatpush3.bf16.msra.mxu0 %v1678_v19 }
 0x5a5   : > { %1566 = vmatprep.subr.bf16.mxu0 %v1898_v8 }
 0x607   : > { %v879_v40 = vpop.f32.mrb[8].mxu1 }
 0x608   : > { %v1536_v41 = vpop.f32.mrb[9].mxu1  ;;  %v1029_v62 = vpack.c.bf16 %v879_v40, %v879_v40 }
 0x609   : > { %v882_v42 = vpop.f32.mrb[10].mxu1 }
 0x60a   : > { %v1537_v43 = vpop.f32.mrb[11].mxu1 }
 0x66d   : > { %v927_v46 = vpop.f32.mrb[12].mxu0 }
 0x66e   : > { %v1030_v47 = vpack.c.bf16 %v927_v46, %v927_v46  ;;  %v1542_v48 = vpop.f32.mrb[13].mxu0 }
 0x66f   : > { %v930_v49 = vpop.f32.mrb[14].mxu0 }
 0x670   : > { %v975_v50 = vpop.f32.mrb[12].mxu1  ;;  %1034 = vrot.lane.b32.xlu0 %v1030_v47, %s1905_s14  ;;  %v1543_v51 = vpop.f32.mrb[15].mxu0  ;;  %v1460_v49 = vld [vmem:[%s2366_s12] ss:$0 sm:$0xff]  ;;  %s1908_s14 = smov [#allocation10]  }
 0x671   : > { %v1031_v52 = vpack.c.bf16 %v975_v50, %v975_v50  ;;  %v1548_v53 = vpop.f32.mrb[13].mxu1 }
 0x672   : > { %v978_v54 = vpop.f32.mrb[14].mxu1 }
 0x673   : > { %1037 = vrot.lane.b32.xlu1 %v1031_v52, %s1906_s22  ;;  %v1549_v55 = vpop.f32.mrb[15].mxu1  ;;  %s1822_s22 = sshll.u32 %s1908_s14, 4  ;;  %s1823_s22 = int_to_ptr.vmem [resolvable:$false] %s1822_s22 }
 0x675   : > { %v1023_v56 = vpop.f32.mrb[16].mxu0 }
 0x676   : > { %v1032_v57 = vpack.c.bf16 %v1023_v56, %v1023_v56  ;;  %v1554_v58 = vpop.f32.mrb[17].mxu0 }
 0x677   : > { %v1026_v59 = vpop.f32.mrb[18].mxu0 }
 0x678   : > { %1040 = vrot.lane.b32.xlu0 %v1032_v57, %s1907_s24  ;;  %v1555_v60 = vpop.f32.mrb[19].mxu0  ;;  %s480_s24 = sand.u32 1, %s1884_s26  }
 0x679   : > { %s1434_s13 = sshll.u32 %s480_s24, 3  ;;  %s1309_s29 = scalar_lea.sflag [#allocation4], %s480_s24 }
 0x67a   : > { %s482_s19 = scalar_lea.vmem [#allocation10], %s1434_s13  ;;  %s1824_s13 = scalar_lea.vmem %s1823_s22, 256 }
 0x67b   : > { %s1322_s20 = sshll.u32 %s482_s19, 4  ;;  %s2313_s20 = int_to_ptr.vmem [resolvable:$true] %s1322_s20 }
 0x67c   : > { %s1818_s27 = scalar_lea.vmem %s2313_s20, 128  ;;  %p1825_p8 = scmp.lt.s32.totalorder %s2313_s20, %s1823_s22 }
 0x67d   : > { %p1819_p2 = scmp.ne.s32.totalorder %s2313_s20, %s1818_s27  ;;  %p1826_p11 = scmp.lt.s32.totalorder %s1824_s13, %s1818_s27 }
 0x67f   : > { %p1820_p4 = pnand %p1819_p2, %p2399_p3  ;;  %p1827_p13 = por %p1826_p11, %p1825_p8 }
 0x681   : > { %p1821_p7 = pneg %p1820_p4 }
 0x683   : > { %p1828_p1 = pnand %p1827_p13, %p1821_p7 }
 0x6e2   : > { %v1035_v61 = vpop.permute.xlu0 %1034 }
 0x6e3   : > { %v1044_v1 = vsel %vm597_vm2, %v1029_v62, %v1035_v61 }
 0x6e5   : > { %v1038_v63 = vpop.permute.xlu1 %1037 }
 0x6e6   : > { %v1047_v2 = vsel %vm1045_vm4, %v1044_v1, %v1038_v63 }
 0x6ea   : > { %v1041_v3 = vpop.permute.xlu0 %1040 }
 0x6eb   : > { %v1050_v4 = vsel %vm1048_vm5, %v1047_v2, %v1041_v3 }
 0x6ec   : > { %1561 = vmatmul.mubr.msk.bf16.vlgmr.msra.gmra.mrb[16].mxu1 %vm491_vm0, %v1050_v4 }
 0x6ed   : > { %1580 = vmatprep.mubr.msk.bf16.mxu1 %vm1899_vm1, %v1898_v8  ;;  %1573 = vmatpush3.bf16.msra.mxu1 %v1680_v30 }
 0x6ee   : > { %1574 = vmatprep.subr.bf16.mxu1 %v1898_v8 }
 0x6f1   : > { %1575 = vmatpush3.bf16.msra.mxu1 %v1681_v31 }
 0x6f2   : > { %1576 = vmatprep.subr.bf16.mxu1 %v1898_v8 }
 0x6f5   : > { %1577 = vmatpush3.bf16.msra.mxu1 %v1682_v32 }
 0x6f6   : > { %1578 = vmatprep.subr.bf16.mxu1 %v1898_v8 }
 0x6f9   : > { %1579 = vmatpush3.bf16.msra.mxu1 %v1683_v33 }
 0x7bf   : > { %v1110_v6 = vpop.f32.mrb[16].mxu1 }
 0x7c0   : > { %v1111_v7 = vadd.f32 %v1450_v5, %v1110_v6  ;;  %v1562_v9 = vpop.f32.mrb[17].mxu1 }
 0x7c1   : > { %v1113_v10 = vpop.f32.mrb[18].mxu1 }
 0x7c2   : > { %v2270_v11 = vadd.f32 %v1111_v7, %v2153_v0  ;;  %v1563_v12 = vpop.f32.mrb[19].mxu1  ;;  %v1679_v0 = vld [vmem:[%s2363_s9 + $0x8] sm:$0xff]  }
 0x7c3   : > { %1567 = vmatpush3.bf16.msra.mxu0 %v1679_v0 }
 0x7c4   : > { %v1119_v13 = vsel %vm491_vm0, %v2270_v11, 0.0 }
 0x7c5   : > { %1120 = vadd.xlane.f32.xlu1 %v1119_v13 }
 0x852   : > { %v1121_v14 = vpop.xlane.xlu1 %1120 }
 0x853   : > { %v1122_v15 = vmul.f32 0.03125, %v1121_v14 }
 0x855   : > { %v1123_v16 = vsub.f32 %v2270_v11, %v1122_v15 }
 0x857   : > { %v1124_v17 = vmul.f32 %v1123_v16, %v1123_v16 }
 0x859   : > { %v1125_v18 = vsel %vm491_vm0, %v1124_v17, 0.0 }
 0x85a   : > { %1126 = vadd.xlane.f32.xlu0 %v1125_v18 }
 0x8e7   : > { %v1127_v20 = vpop.xlane.xlu0 %1126 }
 0x8e8   : > { %v1128_v21 = vmul.f32 0.03125, %v1127_v20 }
 0x8ea   : > { %v1129_v22 = vadd.f32 1e-06, %v1128_v21 }
 0x8ec   : > { %1702 = vrsqrt.f32 %v1129_v22 }
 0x8f6   : > { %v1703_v23 = vpop.eup %1702 }
 0x8f7   : > { %v1131_v25 = vmul.f32 %v1703_v23, %v1123_v16 }
 0x8f9   : > { %v1138_v27 = vmul.f32 %v1454_v24, %v1131_v25 }
 0x8fb   : > { %v1145_v28 = vadd.f32 %v1455_v26, %v1138_v27 }
 0x8fd   : > { %v1146_v29 = vpack.c.bf16 %v1145_v28, %v1145_v28 }
 0x8ff   : > { %1569 = vmatmul.mubr.msk.bf16.vlgmr.msra.gmra.mrb[20].mxu0 %vm491_vm0, %v1146_v29 }
 0x9d2   : > { %v1207_v35 = vpop.f32.mrb[20].mxu0 }
 0x9d3   : > { %v1208_v36 = vadd.f32 %v1456_v34, %v1207_v35  ;;  %v1570_v37 = vpop.f32.mrb[21].mxu0 }
 0x9d4   : > { %v1210_v38 = vpop.f32.mrb[22].mxu0 }
 0x9d5   : > { %v1214_v39 = vmul.f32 %v1208_v36, %v1208_v36  ;;  %v1571_v40 = vpop.f32.mrb[23].mxu0  ;;  %v1213_v45 = vmul.f32 0.5, %v1208_v36 }
 0x9d7   : > { %v1215_v41 = vmul.f32 %v1214_v39, %v1208_v36 }
 0x9d9   : > { %v1216_v42 = vmul.f32 0.044715, %v1215_v41 }
 0x9db   : > { %v1217_v8 = vadd.f32 %v1216_v42, %v1208_v36 }
 0x9dd   : > { %v1218_v43 = vmul.f32 0.7978846, %v1217_v8 }
 0x9df   : > { %1704 = vtanh.f32 %v1218_v43 }
 0x9e9   : > { %v1705_v44 = vpop.eup %1704 }
 0x9ea   : > { %v1220_v46 = vadd.f32 1.0, %v1705_v44 }
 0x9ec   : > { %v1221_v47 = vmul.f32 %v1220_v46, %v1213_v45 }
 0x9ee   : > { %v1222_v48 = vpack.c.bf16 %v1221_v47, %v1221_v47 }
 0x9f0   : > { %1581 = vmatmul.mubr.msk.bf16.vlgmr.msra.gmra.mrb[20].mxu1 %vm1262_vm6, %v1222_v48 }
 0xac3   : > { %v1300_v50 = vpop.f32.mrb[20].mxu1 }
 0xac4   : > { %v1301_v51 = vadd.f32 %v1460_v49, %v1300_v50  ;;  %v1582_v52 = vpop.f32.mrb[21].mxu1 }
 0xac5   : > { %v1303_v53 = vpop.f32.mrb[22].mxu1 }
 0xac6   : > { %v1306_v54 = vadd.f32 %v1301_v51, %v2270_v11  ;;  %v1583_v55 = vpop.f32.mrb[23].mxu1 }
 0xac8   : > { %1307 = vst.msk [vmem:[%s482_s19] sm:$0xff] %vm491_vm0, %v1306_v54 }
 0xac9   : > { %1831 = shalt.err (!%p1828_p1)
}
 0xaca   : > { %s1832_s24 = scalar_lea.hbm %s2311_s15, 128  ;;  %s1836_s17 = scalar_lea.hbm %s2398_s21, 256 }
 0xacb   : > { %p1833_p0 = scmp.ne.s32.totalorder %s2311_s15, %s1832_s24  ;;  %p1837_p9 = scmp.lt.u32.totalorder %s2311_s15, %s2398_s21 }
 0xacc   : > { %p1838_p12 = scmp.lt.u32.totalorder %s1836_s17, %s1832_s24  ;;  %p1840_p2 = scmp.lt.u32.totalorder %s1832_s24, %s2311_s15 }
 0xacd   : > { %p1834_p6 = pnand %p1833_p0, %p2399_p3 }
 0xace   : > { %p1839_p10 = por %p1838_p12, %p1837_p9 }
 0xacf   : > { %p1835_p5 = pneg %p1834_p6 }
 0xad0   : > { %p1841_p4 = por %p1840_p2, %p1839_p10 }
 0xad2   : > { %p1842_p7 = pnand %p1841_p4, %p1835_p5 }
 0xad4   : > { %1845 = shalt.err (!%p1842_p7)
}
 0xad5   : > { %1600 = dma.vmem_to_hbm [thread:$0]  (%p2399_p3), %s2313_s20, 128, %s2311_s15, %s1309_s29  }
 0xad6 PF: > { %s2400_s23 = sld [smem:[#allocation17_spill]]  ;;  %s2401_s25 = sld [smem:[#allocation15_spill]] }
 0xad7   : > { %s2402_s27 = sld [smem:[#allocation20_spill]] }
 0xadc   : > { %p1627_p8 = scmp.ge.s32.totalorder %s2400_s23, 2  ;;  %s1334_s14 = sand.u32 1, %s2401_s25  }
 0xadd   : > { %p2403_p11 = scmp.ne.s32.totalorder %s2402_s27, 0  ;;  %s1335_s22 = scalar_lea.sflag [#allocation4], %s1334_s14 }
 0xadf   : > { %p1616_p13 = pnand %p1627_p8, %p2403_p11 }
 0xae1   : > { %1875 = dma.done.wait (!%p1616_p13), %s1335_s22, 128  }
 0xae2   : > { %1877 = vsyncadd (!%p1616_p13), %s1335_s22, 4294967168  ;;  %s2404_s28 = sld [smem:[#allocation18_spill]]  ;;  %s2405_s13 = sld [smem:[#allocation16_spill]] }
 0xae3   : > { %s2406_s27 = sld [smem:[#allocation19_spill]]  ;;  %s2407_s25 = smov %s1884_s26 }
 0xae8   : > { %p26_p1 = scmp.ge.s32.totalorder %s2404_s28, 4   ;;  %s2408_s26 = smov %s2405_s13 }
 0xaea   :  { %28 = sbr.rel (!%p26_p1) target bundleno = 8 (0x8), region = 124 }
 0xaf1   :  { %1340 = vsyncpa [#allocation3], 1 }
 0xaf2   :  { %1342 = vsyncpa [#allocation3 + $0x1], 1 }
 0xaf3   :  { %1343 = vsyncpa [#allocation6], 1 }
 0xaf4   :  { %1344 = vsyncpa [#allocation9], 1 }
 0xaf5   :  { %1345 = vsyncpa [#allocation4], 1 }
 0xaf6   :  { %1347 = vsyncpa [#allocation4 + $0x1], 1 }

// kernel: tpu_custom_call.1
= control target key start
LH: loop header
LB: loop body
LE: loop exit
PB: predicated region body
PF: predicated region fallthrough
CT: control target
= control target key end

     0   :  { %s2354_s0 = inlined_call_operand.vmem [shape: f32[2,8,32], index: 0, kind: input, shape index: {}]   ;;  %s2355_s1 = inlined_call_operand.vmem [shape: f32[1,32], index: 1, kind: input, shape index: {}]   ;;  %s2356_s2 = inlined_call_operand.vmem [shape: f32[1,32], index: 2, kind: input, shape index: {}]   ;;  %s2357_s3 = inlined_call_operand.vmem [shape: bf16[32,96], index: 3, kind: input, shape index: {}]   ;;  %s2358_s4 = inlined_call_operand.hbm [shape: f32[1,96], index: 4, kind: input, shape index: {}]   ;;  %s2359_s5 = inlined_call_operand.vmem [shape: bf16[32,32], index: 5, kind: input, shape index: {}]   ;;  %s2360_s6 = inlined_call_operand.hbm [shape: f32[1,32], index: 6, kind: input, shape index: {}]   ;;  %s2361_s7 = inlined_call_operand.hbm [shape: f32[1,32], index: 7, kind: input, shape index: {}]   ;;  %s2362_s8 = inlined_call_operand.hbm [shape: f32[1,32], index: 8, kind: input, shape index: {}]   ;;  %s2363_s9 = inlined_call_operand.vmem [shape: bf16[32,64], index: 9, kind: input, shape index: {}]   ;;  %s2364_s10 = inlined_call_operand.vmem [shape: f32[1,64], index: 10, kind: input, shape index: {}]   ;;  %s2365_s11 = inlined_call_operand.vmem [shape: bf16[64,32], index: 11, kind: input, shape index: {}]   ;;  %s2366_s12 = inlined_call_operand.vmem [shape: f32[1,32], index: 12, kind: input, shape index: {}]   ;;  %s2367_s13 = inlined_call_operand.hbm [shape: f32[2,8,32], index: 13, kind: output, shape index: {}]  }
   0x1   :  { %2378 = sst [smem:[#allocation21_spill]] %s2367_s13 }
   0x2   :  { %18 = vsyncpa [#allocation3], 0 }
   0x3   :  { %19 = vsyncpa [#allocation6], 0 }
   0x4   :  { %20 = vsyncpa [#allocation9], 0 }
   0x5   :  { %21 = vsyncpa [#allocation4], 0 }
   0x6   :  { %23 = vsyncpa [#allocation4 + $0x1], 0  ;;  %s1979_s25 = smov 0   ;;  %s1981_s26 = smov 0  }
   0x7   :  { %s1983_s27 = smov 0   ;;  %s1985_s28 = smov 0  }
   0x8 LB: > { %2379 = sst [smem:[#allocation15_spill]] %s1880_s25  ;;  %s2000_s29 = sadd.s32 4294967295, %s1892_s28   ;;  %s1892_s28 = sphi %s1985_s28, %s2404_s28   ;;  %s1888_s27 = sphi %s1983_s27, %s2406_s27   ;;  %s1884_s26 = sphi %s1981_s26, %s2408_s26   ;;  %s1880_s25 = sphi %s1979_s25, %s2407_s25  }
   0x9   : > { %2380 = sst [smem:[#allocation16_spill]] %s1888_s27  ;;  %s1422_s30 = sadd.s32 4294967294, %s1892_s28  }
   0xa   : > { %2381 = sst [smem:[#allocation17_spill]] %s1892_s28  ;;  %s2004_s14 = sadd.s32 1, %s1892_s28  }
   0xb   : > { %2382 = sst [smem:[#allocation18_spill]] %s2004_s14  ;;  %s314_s15 = sadd.s32 1, %s1888_s27 }
   0xc   : > { %s311_s16 = ssub.s32 %s1892_s28, %s2004_s14  ;;  %p324_p0 = scmp.ne.s32.totalorder %s1888_s27, %s1884_s26 }
   0xd   : > { %p312_p1 = scmp.eq.s32.totalorder %s311_s16, 0  ;;  %p325_p2 = scmp.eq.s32.totalorder %s2000_s29, 1 }
   0xe   : > { %p330_p3 = scmp.ne.s32.totalorder %s1884_s26, %s1880_s25  ;;  %p331_p4 = scmp.eq.s32.totalorder %s1422_s30, 1 }
   0xf   : > { %s2015_s17 = scalar_select %p312_p1, %s1888_s27, %s314_s15  }
  0x10   : > { %p2017_p5 = por %p325_p2, %p324_p0  ;;  %p2021_p6 = por %p331_p4, %p330_p3 }
  0x11   : > { %2383 = sst [smem:[#allocation19_spill]] %s2015_s17  ;;  %p1423_p7 = scmp.ge.s32.totalorder %s1892_s28, 1 }
  0x12   : > { %s2384_s18 = scalar_select %p2017_p5, 1, 0 }
  0x13   : > { %s2385_s19 = scalar_select %p2021_p6, 1, 0 }
  0x14   : > { %p338_p8 = scmp.lt.s32.totalorder %s1892_s28, 3  ;;  %p2373_p9 = scmp.eq.s32.totalorder %s2000_s29, 0 }
  0x15   : > { %2386 = sst [smem:[#allocation20_spill]] %s2385_s19  ;;  %s1894_s21 = smov [#allocation5]  }
  0x16   : > { %p2028_p10 = pnand %p1423_p7, %p338_p8  ;;  %s374_s22 = sshll.u32 %s1894_s21, 4  ;;  %s375_s22 = int_to_ptr.vmem [resolvable:$true] %s374_s22 }
  0x17   : > { %s1895_s23 = smov [#allocation2]   ;;  %s1896_s15 = smov [#allocation7]  }
  0x18   : > { %s2387_s20 = scalar_select %p2028_p10, 1, 0 }
  0x19   : > { %p1602_p11 = pneg %p2028_p10  ;;  %s360_s24 = sshll.u32 %s1895_s23, 4  ;;  %s2040_s24 = int_to_ptr.vmem [resolvable:$true] %s360_s24 }
  0x1a   : > { %s385_s16 = sshll.u32 %s1896_s15, 4  ;;  %s1706_s21 = scalar_lea.hbm %s2360_s6, 16  ;;  %s2042_s16 = int_to_ptr.vmem [resolvable:$true] %s385_s16 }
  0x1b   : > { %p2036_p12 = pnand %p2373_p9, %p1602_p11  ;;  %p1707_p13 = scmp.ne.s32.totalorder %s2360_s6, %s1706_s21 }
  0x1c   : > { %p1713_p3 = scmp.lt.u32.totalorder %s1706_s21, %s2360_s6 }
  0x1d   : > { %p2052_p0 = pneg %p2036_p12 }
  0x1f   : > { %p1709_p1 = pnand %p2052_p0, %p1707_p13 }
  0x21   : > { %p1710_p2 = pneg %p1709_p1 }
  0x23   : > { %p1715_p4 = pnand %p1713_p3, %p1710_p2 }
  0x25   : > { %1718 = shalt.err (!%p1715_p4)
}
  0x26   : > { %s1719_s27 = scalar_lea.vmem %s375_s22, 16  ;;  %s1726_s14 = scalar_lea.vmem %s375_s22, 32 }
  0x27   : > { %p1720_p7 = scmp.ne.s32.totalorder %s375_s22, %s1719_s27  ;;  %p1727_p9 = scmp.lt.s32.totalorder %s375_s22, %s375_s22 }
  0x28   : > { %p1728_p6 = scmp.lt.s32.totalorder %s1726_s14, %s1719_s27 }
  0x29   : > { %p1722_p8 = pnand %p1720_p7, %p2052_p0 }
  0x2a   : > { %p1729_p5 = por %p1728_p6, %p1727_p9 }
  0x2b   : > { %p1723_p11 = pneg %p1722_p8 }
  0x2d   : > { %p1730_p10 = pnand %p1729_p5, %p1723_p11 }
  0x2f   : > { %1733 = shalt.err (!%p1730_p10)
}
  0x30   : > { %1608 = dma.hbm_to_vmem [thread:$0]  (!%p2036_p12), %s2360_s6, 16, %s375_s22, [#allocation6]  }
  0x31   : > { %s1734_s15 = scalar_lea.hbm %s2358_s4, 16 }
  0x32   : > { %p1735_p13 = scmp.ne.s32.totalorder %s2358_s4, %s1734_s15  ;;  %p1741_p5 = scmp.lt.u32.totalorder %s1734_s15, %s2358_s4 }
  0x34   : > { %p1737_p1 = pnand %p1735_p13, %p2052_p0 }
  0x36   : > { %p1738_p6 = pneg %p1737_p1 }
  0x38   : > { %p1743_p9 = pnand %p1741_p5, %p1738_p6 }
  0x3a   : > { %1746 = shalt.err (!%p1743_p9)
}
  0x3b   : > { %s1747_s22 = scalar_lea.vmem %s2040_s24, 16  ;;  %s1754_s13 = scalar_lea.vmem %s2040_s24, 32 }
  0x3c   : > { %p1748_p10 = scmp.ne.s32.totalorder %s2040_s24, %s1747_s22  ;;  %p1755_p4 = scmp.lt.s32.totalorder %s2040_s24, %s2040_s24 }
  0x3d   : > { %p1756_p7 = scmp.lt.s32.totalorder %s1754_s13, %s1747_s22 }
  0x3e   : > { %p1750_p2 = pnand %p1748_p10, %p2052_p0 }
  0x3f   : > { %p1757_p8 = por %p1756_p7, %p1755_p4 }
  0x40   : > { %p1751_p3 = pneg %p1750_p2 }
  0x42   : > { %p1758_p11 = pnand %p1757_p8, %p1751_p3 }
  0x44   : > { %1761 = shalt.err (!%p1758_p11)
}
  0x45   : > { %1605 = dma.hbm_to_vmem [thread:$0]  (!%p2036_p12), %s2358_s4, 16, %s2040_s24, [#allocation3]  }
  0x46   : > { %s1762_s21 = scalar_lea.hbm %s2361_s7, 16 }
  0x47   : > { %p1763_p13 = scmp.ne.s32.totalorder %s2361_s7, %s1762_s21  ;;  %p1769_p5 = scmp.lt.u32.totalorder %s1762_s21, %s2361_s7 }
  0x49   : > { %p1765_p1 = pnand %p1763_p13, %p2052_p0 }
  0x4b   : > { %p1766_p6 = pneg %p1765_p1 }
  0x4d   : > { %p1771_p9 = pnand %p1769_p5, %p1766_p6 }
  0x4f   : > { %1774 = shalt.err (!%p1771_p9)
}
  0x50   : > { %s1775_s24 = scalar_lea.vmem %s2042_s16, 16  ;;  %s1782_s13 = scalar_lea.vmem %s2042_s16, 32 }
  0x51   : > { %p1776_p10 = scmp.ne.s32.totalorder %s2042_s16, %s1775_s24  ;;  %p1783_p4 = scmp.lt.s32.totalorder %s2042_s16, %s2042_s16 }
  0x52   : > { %p1784_p7 = scmp.lt.s32.totalorder %s1782_s13, %s1775_s24 }
  0x53   : > { %p1778_p2 = pnand %p1776_p10, %p2052_p0 }
  0x54   : > { %p1785_p8 = por %p1784_p7, %p1783_p4 }
  0x55   : > { %p1779_p3 = pneg %p1778_p2 }
  0x57   : > { %p1786_p11 = pnand %p1785_p8, %p1779_p3 }
  0x59   : > { %1789 = shalt.err (!%p1786_p11)
}
  0x5a   : > { %1611 = dma.hbm_to_vmem [thread:$0]  (!%p2036_p12), %s2361_s7, 16, %s2042_s16, [#allocation6]  }
  0x5b   : > { %s1897_s19 = smov [#allocation8]   ;;  %s1790_s27 = scalar_lea.hbm %s2362_s8, 16 }
  0x5c   : > { %s396_s25 = sshll.u32 %s1897_s19, 4  ;;  %p1791_p13 = scmp.ne.s32.totalorder %s2362_s8, %s1790_s27  ;;  %s397_s25 = int_to_ptr.vmem [resolvable:$true] %s396_s25 }
  0x5d   : > { %p1797_p5 = scmp.lt.u32.totalorder %s1790_s27, %s2362_s8 }
  0x5e   : > { %p1793_p1 = pnand %p1791_p13, %p2052_p0 }
  0x60   : > { %p1794_p6 = pneg %p1793_p1 }
  0x62   : > { %p1799_p9 = pnand %p1797_p5, %p1794_p6 }
  0x64   : > { %1802 = shalt.err (!%p1799_p9)
}
  0x65   : > { %s1803_s16 = scalar_lea.vmem %s397_s25, 16  ;;  %s1810_s28 = scalar_lea.vmem %s397_s25, 32 }
  0x66   : > { %p1804_p10 = scmp.ne.s32.totalorder %s397_s25, %s1803_s16  ;;  %p1811_p4 = scmp.lt.s32.totalorder %s397_s25, %s397_s25 }
  0x67   : > { %p1812_p7 = scmp.lt.s32.totalorder %s1810_s28, %s1803_s16 }
  0x68   : > { %p1806_p2 = pnand %p1804_p10, %p2052_p0 }
  0x69   : > { %p1813_p8 = por %p1812_p7, %p1811_p4 }
  0x6a   : > { %p1807_p3 = pneg %p1806_p2 }
  0x6c   : > { %p1814_p11 = pnand %p1813_p8, %p1807_p3 }
  0x6e   : > { %1817 = shalt.err (!%p1814_p11)
}
  0x6f   : > { %1614 = dma.hbm_to_vmem [thread:$0]  (!%p2036_p12), %s2362_s8, 16, %s397_s25, [#allocation9]  }
  0x70   : > { %p2390_p13 = scmp.ne.s32.totalorder %s2387_s20, 0 }
  0x71   : > { %p2391_p1 = scmp.eq.s32.totalorder (!%p2390_p13), %s2000_s29, 0 }
  0x72   : > { %428 = sbr.rel (%p2390_p13) target bundleno = 2774 (0xad6), region = 72 }
  0x79   : > { %1863 = dma.done.wait (%p2391_p1), [#allocation3], 16   ;;  %p2392_p0 = pmov %p2391_p1 }
  0x7b   : > { %1865 = vsyncadd (%p2392_p0), [#allocation3], 4294967280  ;;  %p2393_p6 = pmov %p2392_p0 }
  0x7c   : > { %p2394_p5 = pmov %p2392_p0 }
  0x7d   : > { %1867 = dma.done.wait (%p2393_p6), [#allocation6], 32  }
  0x7e   : > { %1869 = vsyncadd (%p2394_p5), [#allocation6], 4294967264  ;;  %p2395_p9 = pmov %p2392_p0 }
  0x7f   : > { %p2396_p12 = pmov %p2392_p0 }
  0x80   : > { %1871 = dma.done.wait (%p2395_p9), [#allocation9], 16  }
  0x81   : > { %1873 = vsyncadd (%p2396_p12), [#allocation9], 4294967280  ;;  %p483_p10 = scmp.lt.s32.totalorder %s2000_s29, 1  ;;  %vm491_vm0 = vcmask 261120   ;;  %v1674_v7 = vld [vmem:[%s2357_s3] sm:$0xff]   ;;  %v1898_v8 = vmov 0.0  }
  0x82   : > { %1500 = vmatprep.subr.bf16.mxu0 %v1898_v8  ;;  %vm1899_vm1 = vmmov 0   ;;  %v1675_v9 = vld [vmem:[%s2357_s3 + $0x8] sm:$0xff]   ;;  %1508 = vmatprep.subr.bf16.mxu1 %v1898_v8  ;;  %v1436_v14 = vld [vmem:[%s2355_s1] ss:$0 sm:$0xff]  ;;  %s1900_s17 = smov 56   ;;  %s1901_s19 = smov 104  }
  0x83   : > { %s484_s20 = scalar_select %p483_p10, %s2000_s29, 1  ;;  %1504 = vmatprep.mubr.msk.bf16.mxu0 %vm1899_vm1, %v1898_v8  ;;  %1501 = vmatpush3.bf16.msra.mxu0 %v1674_v7  ;;  %v1437_v16 = vld [vmem:[%s2356_s2] ss:$0 sm:$0xff]  ;;  %vm597_vm2 = vcmask 64512   ;;  %vm841_vm3 = vcmask 1043456   ;;  %vm1045_vm4 = vcmask 130048  }
  0x84   : > { %1502 = vmatprep.subr.bf16.mxu0 %v1898_v8  ;;  %1510 = vmatprep.mubr.msk.bf16.mxu1 %vm1899_vm1, %v1898_v8  ;;  %v1438_v20 = vld [vmem:[#allocation2] ss:$0 sm:$0xff]  ;;  %s1904_s23 = smov 112   ;;  %s1905_s14 = smov 8   ;;  %vm1048_vm5 = vcmask 195584   ;;  %vm1262_vm6 = vcmask 523264  }
  0x85   : > { %s1435_s30 = sshll.u32 %s484_s20, 3  ;;  %s1902_s20 = smov 80  }
  0x86   : > { %s486_s21 = scalar_lea.vmem %s2354_s0, %s1435_s30  ;;  %s1903_s30 = smov 120  }
  0x87   : > { %v2153_v0 = vld [vmem:[%s486_s21] sm:$0xff]  ;;  %1503 = vmatpush3.bf16.msra.mxu0 %v1675_v9  ;;  %s1906_s22 = smov 16   ;;  %s1907_s24 = smov 24  }
  0x88   : > { %v492_v1 = vsel %vm491_vm0, %v2153_v0, 0.0  ;;  %1514 = vmatprep.subr.bf16.mxu0 %v1898_v8  ;;  %s2397_s25 = sld [smem:[#allocation21_spill]]  ;;  %p2399_p3 = scmp.ne.s32.totalorder %s2384_s18, 0 }
  0x89   : > { %493 = vadd.xlane.f32.xlu0 %v492_v1 }
  0x8e   : > { %s2398_s21 = smov %s2397_s25 }
 0x116   : > { %v494_v2 = vpop.xlane.xlu0 %493 }
 0x117   : > { %v496_v3 = vmul.f32 0.03125, %v494_v2 }
 0x119   : > { %v497_v4 = vsub.f32 %v2153_v0, %v496_v3 }
 0x11b   : > { %v498_v5 = vmul.f32 %v497_v4, %v497_v4 }
 0x11d   : > { %v499_v6 = vsel %vm491_vm0, %v498_v5, 0.0 }
 0x11e   : > { %500 = vadd.xlane.f32.xlu0 %v499_v6 }
 0x1ab   : > { %v501_v10 = vpop.xlane.xlu0 %500 }
 0x1ac   : > { %v502_v11 = vmul.f32 0.03125, %v501_v10 }
 0x1ae   : > { %v503_v12 = vadd.f32 1e-06, %v502_v11 }
 0x1b0   : > { %1684 = vrsqrt.f32 %v503_v12 }
 0x1ba   : > { %v1685_v13 = vpop.eup %1684 }
 0x1bb   : > { %v505_v15 = vmul.f32 %v1685_v13, %v497_v4 }
 0x1bd   : > { %v512_v17 = vmul.f32 %v1436_v14, %v505_v15 }
 0x1bf   : > { %v519_v18 = vadd.f32 %v1437_v16, %v512_v17 }
 0x1c1   : > { %v520_v19 = vpack.c.bf16 %v519_v18, %v519_v18 }
 0x1c3   : > { %1505 = vmatmul.mubr.msk.bf16.vlgmr.msra.gmra.mrb[0].mxu0 %vm491_vm0, %v520_v19 }
 0x1c4   : > { %1516 = vmatprep.mubr.msk.bf16.mxu0 %vm1899_vm1, %v1898_v8 }
 0x296   : > { %v581_v21 = vpop.f32.mrb[0].mxu0 }
 0x297   : > { %v582_v22 = vadd.f32 %v1438_v20, %v581_v21  ;;  %v1506_v23 = vpop.f32.mrb[1].mxu0 }
 0x298   : > { %v584_v24 = vpop.f32.mrb[2].mxu0 }
 0x299   : > { %v2182_v25 = vpack.c.bf16 %v582_v22, %v582_v22  ;;  %v1507_v26 = vpop.f32.mrb[3].mxu0 }
 0x29b   : > { %593 = vrot.lane.b32.xlu0 %v2182_v25, %s1900_s17  ;;  %589 = vrot.lane.b32.xlu1 %v2182_v25, %s1901_s19  ;;  %s1467_s17 = sshll.u32 %s2000_s29, 7 }
 0x29c   : > { %s2311_s15 = scalar_lea.hbm %s2397_s25, %s1467_s17 }
 0x29f   : > { %591 = vrot.lane.b32.xlu1 %v2182_v25, %s1902_s20 }
 0x2a3   : > { %595 = vrot.lane.b32.xlu1 %v2182_v25, %s1903_s30 }
 0x30d   : > { %v2188_v27 = vpop.permute.xlu1 %589  ;;  %v2194_v29 = vpop.permute.xlu0 %593 }
 0x30e   : > { %644 = vrot.lane.b32.xlu1 %v2188_v27, %s1903_s30 }
 0x311   : > { %v2191_v28 = vpop.permute.xlu1 %591 }
 0x312   : > { %692 = vrot.lane.b32.xlu1 %v2191_v28, %s1903_s30 }
 0x315   : > { %v596_v30 = vpop.permute.xlu1 %595 }
 0x316   : > { %740 = vrot.lane.b32.xlu1 %v2194_v29, %s1903_s30  ;;  %v602_v31 = vsel %vm597_vm2, %v596_v30, 0 }
 0x317   : > { %1509 = vmatpush3.bf16.xpose.msra.mxu1 %v602_v31 }
 0x318   : > { %1520 = vmatprep.subr.bf16.mxu1 %v1898_v8 }
 0x31e   : > { %1511 = vmatmul.mubr.msk.bf16.vlgmr.msra.gmra.mrb[0].mxu1 %vm597_vm2, %v2182_v25 }
 0x31f   : > { %1522 = vmatprep.mubr.msk.bf16.mxu1 %vm1899_vm1, %v1898_v8 }
 0x380   : > { %v645_v32 = vpop.permute.xlu1 %644 }
 0x381   : > { %v650_v33 = vsel %vm597_vm2, %v645_v32, 0 }
 0x382   : > { %1515 = vmatpush3.bf16.xpose.msra.mxu0 %v650_v33 }
 0x383   : > { %1526 = vmatprep.subr.bf16.mxu0 %v1898_v8 }
 0x384   : > { %v693_v34 = vpop.permute.xlu1 %692 }
 0x385   : > { %v698_v35 = vsel %vm597_vm2, %v693_v34, 0 }
 0x386   : > { %1521 = vmatpush3.bf16.xpose.msra.mxu1 %v698_v35 }
 0x387   : > { %1532 = vmatprep.subr.bf16.mxu1 %v1898_v8 }
 0x388   : > { %v741_v36 = vpop.permute.xlu1 %740 }
 0x389   : > { %v746_v37 = vsel %vm597_vm2, %v741_v36, 0  ;;  %1517 = vmatmul.mubr.msk.bf16.vlgmr.msra.gmra.mrb[4].mxu0 %vm597_vm2, %v2188_v27 }
 0x38a   : > { %1527 = vmatpush3.bf16.xpose.msra.mxu0 %v746_v37  ;;  %1528 = vmatprep.mubr.msk.bf16.mxu0 %vm1899_vm1, %v1898_v8 }
 0x38b   : > { %1538 = vmatprep.subr.bf16.mxu0 %v1898_v8 }
 0x38d   : > { %1523 = vmatmul.mubr.msk.bf16.vlgmr.msra.gmra.mrb[4].mxu1 %vm597_vm2, %v2191_v28 }
 0x38e   : > { %1534 = vmatprep.mubr.msk.bf16.mxu1 %vm1899_vm1, %v1898_v8 }
 0x391   : > { %1529 = vmatmul.mubr.msk.bf16.vlgmr.msra.gmra.mrb[8].mxu0 %vm597_vm2, %v2194_v29 }
 0x392   : > { %1540 = vmatprep.mubr.msk.bf16.mxu0 %vm1899_vm1, %v1898_v8 }
 0x3f1   : > { %v638_v38 = vpop.f32.mrb[0].mxu1 }
 0x3f2   : > { %v1512_v39 = vpop.f32.mrb[1].mxu1  ;;  %v788_v40 = vsel %vm597_vm2, %v638_v38, -inf }
 0x3f3   : > { %789 = vmax.xlane.f32.xlu1 %v788_v40  ;;  %v641_v41 = vpop.f32.mrb[2].mxu1 }
 0x3f4   : > { %v1513_v42 = vpop.f32.mrb[3].mxu1 }
 0x45c   : > { %v686_v43 = vpop.f32.mrb[4].mxu0 }
 0x45d   : > { %v1518_v44 = vpop.f32.mrb[5].mxu0  ;;  %v791_v45 = vsel %vm597_vm2, %v686_v43, -inf }
 0x45e   : > { %792 = vmax.xlane.f32.xlu0 %v791_v45  ;;  %v689_v46 = vpop.f32.mrb[6].mxu0  ;;  %v1676_v44 = vld [vmem:[%s2359_s5] sm:$0xff]   ;;  %v1677_v45 = vld [vmem:[%s2359_s5 + $0x8] sm:$0xff]  }
 0x45f   : > { %v1519_v47 = vpop.f32.mrb[7].mxu0 }
 0x460   : > { %v734_v48 = vpop.f32.mrb[4].mxu1 }
 0x461   : > { %v1524_v49 = vpop.f32.mrb[5].mxu1  ;;  %v794_v50 = vsel %vm597_vm2, %v734_v48, -inf }
 0x462   : > { %795 = vmax.xlane.f32.xlu1 %v794_v50  ;;  %v737_v51 = vpop.f32.mrb[6].mxu1 }
 0x463   : > { %v1525_v52 = vpop.f32.mrb[7].mxu1 }
 0x464   : > { %v782_v53 = vpop.f32.mrb[8].mxu0 }
 0x465   : > { %v1530_v54 = vpop.f32.mrb[9].mxu0  ;;  %v797_v55 = vsel %vm597_vm2, %v782_v53, -inf }
 0x466   : > { %798 = vmax.xlane.f32.xlu0 %v797_v55  ;;  %v785_v56 = vpop.f32.mrb[10].mxu0 }
 0x467   : > { %v1531_v57 = vpop.f32.mrb[11].mxu0 }
 0x473   : > { %836 = vrot.lane.b32.xlu1 %v2182_v25, %s1904_s23 }
 0x480   : > { %v790_v58 = vpop.xlane.xlu1 %789 }
 0x481   : > { %v800_v59 = vsub.f32 %v638_v38, %v790_v58 }
 0x483   : > { %v804_v60 = vmul.f32 1.442695, %v800_v59 }
 0x485   : > { %1686 = vpow2.f32 %v804_v60 }
 0x48f   : > { %v1687_v61 = vpop.eup %1686 }
 0x490   : > { %v812_v62 = vsel %vm597_vm2, %v1687_v61, 0.0 }
 0x497   : > { %813 = vadd.xlane.f32.xlu1 %v812_v62 }
 0x4eb   : > { %v793_v63 = vpop.xlane.xlu0 %792 }
 0x4ec   : > { %v801_v1 = vsub.f32 %v686_v43, %v793_v63 }
 0x4ee   : > { %v806_v2 = vmul.f32 1.442695, %v801_v1 }
 0x4ef   : > { %v796_v3 = vpop.xlane.xlu1 %795 }
 0x4f0   : > { %1688 = vpow2.f32 %v806_v2  ;;  %v802_v4 = vsub.f32 %v734_v48, %v796_v3 }
 0x4f2   : > { %v808_v5 = vmul.f32 1.442695, %v802_v4 }
 0x4f3   : > { %v837_v6 = vpop.permute.xlu1 %836  ;;  %v799_v7 = vpop.xlane.xlu0 %798 }
 0x4f4   : > { %1690 = vpow2.f32 %v808_v5  ;;  %v843_v9 = vsel %vm841_vm3, %v837_v6, 0  ;;  %v803_v10 = vsub.f32 %v782_v53, %v799_v7  ;;  %v1450_v5 = vld [vmem:[#allocation5] ss:$0 sm:$0xff] }
 0x4f5   : > { %1533 = vmatpush3.bf16.msra.mxu1 %v843_v9 }
 0x4f6   : > { %v810_v11 = vmul.f32 1.442695, %v803_v10  ;;  %1544 = vmatprep.subr.bf16.mxu1 %v1898_v8 }
 0x4f8   : > { %1692 = vpow2.f32 %v810_v11 }
 0x4fa   : > { %v1689_v12 = vpop.eup %1688 }
 0x4fb   : > { %v815_v13 = vsel %vm597_vm2, %v1689_v12, 0.0 }
 0x4fc   : > { %816 = vadd.xlane.f32.xlu0 %v815_v13 }
 0x4fe   : > { %v1691_v14 = vpop.eup %1690 }
 0x4ff   : > { %v818_v15 = vsel %vm597_vm2, %v1691_v14, 0.0 }
 0x500   : > { %819 = vadd.xlane.f32.xlu1 %v818_v15 }
 0x502   : > { %v1693_v16 = vpop.eup %1692 }
 0x503   : > { %v821_v17 = vsel %vm597_vm2, %v1693_v16, 0.0 }
 0x504   : > { %822 = vadd.xlane.f32.xlu0 %v821_v17 }
 0x511   : > { %933 = vrot.lane.b32.xlu1 %v2191_v28, %s1904_s23 }
 0x515   : > { %981 = vrot.lane.b32.xlu1 %v2194_v29, %s1904_s23 }
 0x51a   : > { %885 = vrot.lane.b32.xlu0 %v2188_v27, %s1904_s23 }
 0x524   : > { %v814_v18 = vpop.xlane.xlu1 %813 }
 0x525   : > { %1694 = vrcp.f32 %v814_v18 }
 0x52f   : > { %v1695_v19 = vpop.eup %1694 }
 0x530   : > { %v828_v20 = vmul.f32 %v1695_v19, %v1687_v61  ;;  %v1678_v19 = vld [vmem:[%s2363_s9] sm:$0xff]  }
 0x532   : > { %v832_v21 = vpack.c.bf16 %v828_v20, %v828_v20 }
 0x534   : > { %1535 = vmatmul.mubr.msk.bf16.vlgmr.msra.gmra.mrb[8].mxu1 %vm597_vm2, %v832_v21 }
 0x535   : > { %1546 = vmatprep.mubr.msk.bf16.mxu1 %vm1899_vm1, %v1898_v8 }
 0x589   : > { %v817_v22 = vpop.xlane.xlu0 %816 }
 0x58a   : > { %1696 = vrcp.f32 %v817_v22 }
 0x58d   : > { %v820_v23 = vpop.xlane.xlu1 %819 }
 0x58e   : > { %1698 = vrcp.f32 %v820_v23 }
 0x591   : > { %v934_v24 = vpop.permute.xlu1 %933  ;;  %v823_v25 = vpop.xlane.xlu0 %822 }
 0x592   : > { %v939_v26 = vsel %vm841_vm3, %v934_v24, 0  ;;  %1700 = vrcp.f32 %v823_v25  ;;  %v1454_v24 = vld [vmem:[#allocation7] ss:$0 sm:$0xff] }
 0x593   : > { %1545 = vmatpush3.bf16.msra.mxu1 %v939_v26  ;;  %v1455_v26 = vld [vmem:[#allocation8] ss:$0 sm:$0xff] }
 0x594   : > { %v1697_v27 = vpop.eup %1696  ;;  %1556 = vmatprep.subr.bf16.mxu1 %v1898_v8 }
 0x595   : > { %v829_v28 = vmul.f32 %v1697_v27, %v1689_v12  ;;  %v886_v29 = vpop.permute.xlu0 %885  ;;  %v982_v31 = vpop.permute.xlu1 %981 }
 0x596   : > { %v891_v30 = vsel %vm841_vm3, %v886_v29, 0  ;;  %v987_v35 = vsel %vm841_vm3, %v982_v31, 0  ;;  %v1681_v31 = vld [vmem:[%s2365_s11 + $0x8] sm:$0xff]  }
 0x597   : > { %1539 = vmatpush3.bf16.msra.mxu0 %v891_v30  ;;  %v833_v32 = vpack.c.bf16 %v829_v28, %v829_v28  ;;  %v1680_v30 = vld [vmem:[%s2365_s11] sm:$0xff]  }
 0x598   : > { %v1699_v33 = vpop.eup %1698  ;;  %1550 = vmatprep.subr.bf16.mxu0 %v1898_v8 }
 0x599   : > { %v830_v34 = vmul.f32 %v1699_v33, %v1691_v14  ;;  %v1683_v33 = vld [vmem:[%s2365_s11 + $0x18] sm:$0xff]  }
 0x59a   : > { %1541 = vmatmul.mubr.msk.bf16.vlgmr.msra.gmra.mrb[12].mxu0 %vm597_vm2, %v833_v32  ;;  %v1682_v32 = vld [vmem:[%s2365_s11 + $0x10] sm:$0xff]  }
 0x59b   : > { %1551 = vmatpush3.bf16.msra.mxu0 %v987_v35  ;;  %v834_v36 = vpack.c.bf16 %v830_v34, %v830_v34  ;;  %1552 = vmatprep.mubr.msk.bf16.mxu0 %vm1899_vm1, %v1898_v8  ;;  %v1456_v34 = vld [vmem:[%s2364_s10] ss:$0 sm:$0xff] }
 0x59c   : > { %v1701_v37 = vpop.eup %1700  ;;  %1564 = vmatprep.subr.bf16.mxu0 %v1898_v8 }
 0x59d   : > { %v831_v38 = vmul.f32 %v1701_v37, %v1693_v16  ;;  %1547 = vmatmul.mubr.msk.bf16.vlgmr.msra.gmra.mrb[12].mxu1 %vm597_vm2, %v834_v36 }
 0x59e   : > { %1560 = vmatprep.mubr.msk.bf16.mxu1 %vm1899_vm1, %v1898_v8  ;;  %1557 = vmatpush3.bf16.msra.mxu1 %v1676_v44 }
 0x59f   : > { %v835_v39 = vpack.c.bf16 %v831_v38, %v831_v38  ;;  %1558 = vmatprep.subr.bf16.mxu1 %v1898_v8 }
 0x5a2   : > { %1553 = vmatmul.mubr.msk.bf16.vlgmr.msra.gmra.mrb[16].mxu0 %vm597_vm2, %v835_v39  ;;  %1559 = vmatpush3.bf16.msra.mxu1 %v1677_v45 }
 0x5a3   : > { %1568 = vmatprep.mubr.msk.bf16.mxu0 %vm1899_vm1, %v1898_v8  ;;  %1572 = vmatprep.subr.bf16.mxu1 %v1898_v8 }
 0x5a4   : > { %1565 = vmatpush3.bf16.msra.mxu0 %v1678_v19 }
 0x5a5   : > { %1566 = vmatprep.subr.bf16.mxu0 %v1898_v8 }
 0x607   : > { %v879_v40 = vpop.f32.mrb[8].mxu1 }
 0x608   : > { %v1536_v41 = vpop.f32.mrb[9].mxu1  ;;  %v1029_v62 = vpack.c.bf16 %v879_v40, %v879_v40 }
 0x609   : > { %v882_v42 = vpop.f32.mrb[10].mxu1 }
 0x60a   : > { %v1537_v43 = vpop.f32.mrb[11].mxu1 }
 0x66d   : > { %v927_v46 = vpop.f32.mrb[12].mxu0 }
 0x66e   : > { %v1030_v47 = vpack.c.bf16 %v927_v46, %v927_v46  ;;  %v1542_v48 = vpop.f32.mrb[13].mxu0 }
 0x66f   : > { %v930_v49 = vpop.f32.mrb[14].mxu0 }
 0x670   : > { %v975_v50 = vpop.f32.mrb[12].mxu1  ;;  %1034 = vrot.lane.b32.xlu0 %v1030_v47, %s1905_s14  ;;  %v1543_v51 = vpop.f32.mrb[15].mxu0  ;;  %v1460_v49 = vld [vmem:[%s2366_s12] ss:$0 sm:$0xff]  ;;  %s1908_s14 = smov [#allocation10]  }
 0x671   : > { %v1031_v52 = vpack.c.bf16 %v975_v50, %v975_v50  ;;  %v1548_v53 = vpop.f32.mrb[13].mxu1 }
 0x672   : > { %v978_v54 = vpop.f32.mrb[14].mxu1 }
 0x673   : > { %1037 = vrot.lane.b32.xlu1 %v1031_v52, %s1906_s22  ;;  %v1549_v55 = vpop.f32.mrb[15].mxu1  ;;  %s1822_s22 = sshll.u32 %s1908_s14, 4  ;;  %s1823_s22 = int_to_ptr.vmem [resolvable:$false] %s1822_s22 }
 0x675   : > { %v1023_v56 = vpop.f32.mrb[16].mxu0 }
 0x676   : > { %v1032_v57 = vpack.c.bf16 %v1023_v56, %v1023_v56  ;;  %v1554_v58 = vpop.f32.mrb[17].mxu0 }
 0x677   : > { %v1026_v59 = vpop.f32.mrb[18].mxu0 }
 0x678   : > { %1040 = vrot.lane.b32.xlu0 %v1032_v57, %s1907_s24  ;;  %v1555_v60 = vpop.f32.mrb[19].mxu0  ;;  %s480_s24 = sand.u32 1, %s1884_s26  }
 0x679   : > { %s1434_s13 = sshll.u32 %s480_s24, 3  ;;  %s1309_s29 = scalar_lea.sflag [#allocation4], %s480_s24 }
 0x67a   : > { %s482_s19 = scalar_lea.vmem [#allocation10], %s1434_s13  ;;  %s1824_s13 = scalar_lea.vmem %s1823_s22, 256 }
 0x67b   : > { %s1322_s20 = sshll.u32 %s482_s19, 4  ;;  %s2313_s20 = int_to_ptr.vmem [resolvable:$true] %s1322_s20 }
 0x67c   : > { %s1818_s27 = scalar_lea.vmem %s2313_s20, 128  ;;  %p1825_p8 = scmp.lt.s32.totalorder %s2313_s20, %s1823_s22 }
 0x67d   : > { %p1819_p2 = scmp.ne.s32.totalorder %s2313_s20, %s1818_s27  ;;  %p1826_p11 = scmp.lt.s32.totalorder %s1824_s13, %s1818_s27 }
 0x67f   : > { %p1820_p4 = pnand %p1819_p2, %p2399_p3  ;;  %p1827_p13 = por %p1826_p11, %p1825_p8 }
 0x681   : > { %p1821_p7 = pneg %p1820_p4 }
 0x683   : > { %p1828_p1 = pnand %p1827_p13, %p1821_p7 }
 0x6e2   : > { %v1035_v61 = vpop.permute.xlu0 %1034 }
 0x6e3   : > { %v1044_v1 = vsel %vm597_vm2, %v1029_v62, %v1035_v61 }
 0x6e5   : > { %v1038_v63 = vpop.permute.xlu1 %1037 }
 0x6e6   : > { %v1047_v2 = vsel %vm1045_vm4, %v1044_v1, %v1038_v63 }
 0x6ea   : > { %v1041_v3 = vpop.permute.xlu0 %1040 }
 0x6eb   : > { %v1050_v4 = vsel %vm1048_vm5, %v1047_v2, %v1041_v3 }
 0x6ec   : > { %1561 = vmatmul.mubr.msk.bf16.vlgmr.msra.gmra.mrb[16].mxu1 %vm491_vm0, %v1050_v4 }
 0x6ed   : > { %1580 = vmatprep.mubr.msk.bf16.mxu1 %vm1899_vm1, %v1898_v8  ;;  %1573 = vmatpush3.bf16.msra.mxu1 %v1680_v30 }
 0x6ee   : > { %1574 = vmatprep.subr.bf16.mxu1 %v1898_v8 }
 0x6f1   : > { %1575 = vmatpush3.bf16.msra.mxu1 %v1681_v31 }
 0x6f2   : > { %1576 = vmatprep.subr.bf16.mxu1 %v1898_v8 }
 0x6f5   : > { %1577 = vmatpush3.bf16.msra.mxu1 %v1682_v32 }
 0x6f6   : > { %1578 = vmatprep.subr.bf16.mxu1 %v1898_v8 }
 0x6f9   : > { %1579 = vmatpush3.bf16.msra.mxu1 %v1683_v33 }
 0x7bf   : > { %v1110_v6 = vpop.f32.mrb[16].mxu1 }
 0x7c0   : > { %v1111_v7 = vadd.f32 %v1450_v5, %v1110_v6  ;;  %v1562_v9 = vpop.f32.mrb[17].mxu1 }
 0x7c1   : > { %v1113_v10 = vpop.f32.mrb[18].mxu1 }
 0x7c2   : > { %v2270_v11 = vadd.f32 %v1111_v7, %v2153_v0  ;;  %v1563_v12 = vpop.f32.mrb[19].mxu1  ;;  %v1679_v0 = vld [vmem:[%s2363_s9 + $0x8] sm:$0xff]  }
 0x7c3   : > { %1567 = vmatpush3.bf16.msra.mxu0 %v1679_v0 }
 0x7c4   : > { %v1119_v13 = vsel %vm491_vm0, %v2270_v11, 0.0 }
 0x7c5   : > { %1120 = vadd.xlane.f32.xlu1 %v1119_v13 }
 0x852   : > { %v1121_v14 = vpop.xlane.xlu1 %1120 }
 0x853   : > { %v1122_v15 = vmul.f32 0.03125, %v1121_v14 }
 0x855   : > { %v1123_v16 = vsub.f32 %v2270_v11, %v1122_v15 }
 0x857   : > { %v1124_v17 = vmul.f32 %v1123_v16, %v1123_v16 }
 0x859   : > { %v1125_v18 = vsel %vm491_vm0, %v1124_v17, 0.0 }
 0x85a   : > { %1126 = vadd.xlane.f32.xlu0 %v1125_v18 }
 0x8e7   : > { %v1127_v20 = vpop.xlane.xlu0 %1126 }
 0x8e8   : > { %v1128_v21 = vmul.f32 0.03125, %v1127_v20 }
 0x8ea   : > { %v1129_v22 = vadd.f32 1e-06, %v1128_v21 }
 0x8ec   : > { %1702 = vrsqrt.f32 %v1129_v22 }
 0x8f6   : > { %v1703_v23 = vpop.eup %1702 }
 0x8f7   : > { %v1131_v25 = vmul.f32 %v1703_v23, %v1123_v16 }
 0x8f9   : > { %v1138_v27 = vmul.f32 %v1454_v24, %v1131_v25 }
 0x8fb   : > { %v1145_v28 = vadd.f32 %v1455_v26, %v1138_v27 }
 0x8fd   : > { %v1146_v29 = vpack.c.bf16 %v1145_v28, %v1145_v28 }
 0x8ff   : > { %1569 = vmatmul.mubr.msk.bf16.vlgmr.msra.gmra.mrb[20].mxu0 %vm491_vm0, %v1146_v29 }
 0x9d2   : > { %v1207_v35 = vpop.f32.mrb[20].mxu0 }
 0x9d3   : > { %v1208_v36 = vadd.f32 %v1456_v34, %v1207_v35  ;;  %v1570_v37 = vpop.f32.mrb[21].mxu0 }
 0x9d4   : > { %v1210_v38 = vpop.f32.mrb[22].mxu0 }
 0x9d5   : > { %v1214_v39 = vmul.f32 %v1208_v36, %v1208_v36  ;;  %v1571_v40 = vpop.f32.mrb[23].mxu0  ;;  %v1213_v45 = vmul.f32 0.5, %v1208_v36 }
 0x9d7   : > { %v1215_v41 = vmul.f32 %v1214_v39, %v1208_v36 }
 0x9d9   : > { %v1216_v42 = vmul.f32 0.044715, %v1215_v41 }
 0x9db   : > { %v1217_v8 = vadd.f32 %v1216_v42, %v1208_v36 }
 0x9dd   : > { %v1218_v43 = vmul.f32 0.7978846, %v1217_v8 }
 0x9df   : > { %1704 = vtanh.f32 %v1218_v43 }
 0x9e9   : > { %v1705_v44 = vpop.eup %1704 }
 0x9ea   : > { %v1220_v46 = vadd.f32 1.0, %v1705_v44 }
 0x9ec   : > { %v1221_v47 = vmul.f32 %v1220_v46, %v1213_v45 }
 0x9ee   : > { %v1222_v48 = vpack.c.bf16 %v1221_v47, %v1221_v47 }
 0x9f0   : > { %1581 = vmatmul.mubr.msk.bf16.vlgmr.msra.gmra.mrb[20].mxu1 %vm1262_vm6, %v1222_v48 }
 0xac3   : > { %v1300_v50 = vpop.f32.mrb[20].mxu1 }
 0xac4   : > { %v1301_v51 = vadd.f32 %v1460_v49, %v1300_v50  ;;  %v1582_v52 = vpop.f32.mrb[21].mxu1 }
 0xac5   : > { %v1303_v53 = vpop.f32.mrb[22].mxu1 }
 0xac6   : > { %v1306_v54 = vadd.f32 %v1301_v51, %v2270_v11  ;;  %v1583_v55 = vpop.f32.mrb[23].mxu1 }
 0xac8   : > { %1307 = vst.msk [vmem:[%s482_s19] sm:$0xff] %vm491_vm0, %v1306_v54 }
 0xac9   : > { %1831 = shalt.err (!%p1828_p1)
}
 0xaca   : > { %s1832_s24 = scalar_lea.hbm %s2311_s15, 128  ;;  %s1836_s17 = scalar_lea.hbm %s2398_s21, 256 }
 0xacb   : > { %p1833_p0 = scmp.ne.s32.totalorder %s2311_s15, %s1832_s24  ;;  %p1837_p9 = scmp.lt.u32.totalorder %s2311_s15, %s2398_s21 }
 0xacc   : > { %p1838_p12 = scmp.lt.u32.totalorder %s1836_s17, %s1832_s24  ;;  %p1840_p2 = scmp.lt.u32.totalorder %s1832_s24, %s2311_s15 }
 0xacd   : > { %p1834_p6 = pnand %p1833_p0, %p2399_p3 }
 0xace   : > { %p1839_p10 = por %p1838_p12, %p1837_p9 }
 0xacf   : > { %p1835_p5 = pneg %p1834_p6 }
 0xad0   : > { %p1841_p4 = por %p1840_p2, %p1839_p10 }
 0xad2   : > { %p1842_p7 = pnand %p1841_p4, %p1835_p5 }
 0xad4   : > { %1845 = shalt.err (!%p1842_p7)
}
 0xad5   : > { %1600 = dma.vmem_to_hbm [thread:$0]  (%p2399_p3), %s2313_s20, 128, %s2311_s15, %s1309_s29  }
 0xad6 PF: > { %s2400_s23 = sld [smem:[#allocation17_spill]]  ;;  %s2401_s25 = sld [smem:[#allocation15_spill]] }
 0xad7   : > { %s2402_s27 = sld [smem:[#allocation20_spill]] }
 0xadc   : > { %p1627_p8 = scmp.ge.s32.totalorder %s2400_s23, 2  ;;  %s1334_s14 = sand.u32 1, %s2401_s25  }
 0xadd   : > { %p2403_p11 = scmp.ne.s32.totalorder %s2402_s27, 0  ;;  %s1335_s22 = scalar_lea.sflag [#allocation4], %s1334_s14 }
 0xadf   : > { %p1616_p13 = pnand %p1627_p8, %p2403_p11 }
 0xae1   : > { %1875 = dma.done.wait (!%p1616_p13), %s1335_s22, 128  }
 0xae2   : > { %1877 = vsyncadd (!%p1616_p13), %s1335_s22, 4294967168  ;;  %s2404_s28 = sld [smem:[#allocation18_spill]]  ;;  %s2405_s13 = sld [smem:[#allocation16_spill]] }
 0xae3   : > { %s2406_s27 = sld [smem:[#allocation19_spill]]  ;;  %s2407_s25 = smov %s1884_s26 }
 0xae8   : > { %p26_p1 = scmp.ge.s32.totalorder %s2404_s28, 4   ;;  %s2408_s26 = smov %s2405_s13 }
 0xaea   :  { %28 = sbr.rel (!%p26_p1) target bundleno = 8 (0x8), region = 124 }
 0xaf1   :  { %1340 = vsyncpa [#allocation3], 1 }
 0xaf2   :  { %1342 = vsyncpa [#allocation3 + $0x1], 1 }
 0xaf3   :  { %1343 = vsyncpa [#allocation6], 1 }
 0xaf4   :  { %1344 = vsyncpa [#allocation9], 1 }
 0xaf5   :  { %1345 = vsyncpa [#allocation4], 1 }
 0xaf6   :  { %1347 = vsyncpa [#allocation4 + $0x1], 1 }

</bundles_post_ra>
